<compile_context>
chip_gen: v7x
topology: tpu7x:2x2x1
jax: 0.10.0
libtpu: 0.0.40
codegen_flags: <defaults>
</compile_context>

<pallas_src>
import functools

import jax
import jax.numpy as jnp
from jax.experimental import pallas as pl
from jax.experimental.pallas import tpu as pltpu

STATE_SIZE = 16
HIDDEN = 25
N_ACTIONS = 3
HIDDEN_PAD = 128   # lane-aligned hidden width; each LSTM gate gets its own 128-lane block
N_PAD = 128        # lane-dense output width (sliced back to N_ACTIONS in the wrapper)


def _elu(x):
    # ELU(alpha=1): x if x > 0 else exp(x) - 1   (exp(min(x,0)) avoids overflow)
    return jnp.where(x > 0, x, jnp.exp(jnp.minimum(x, 0.0)) - 1.0)


def _dqn_kernel(x_ref, w1_ref, b1_ref, w2_ref, b2_ref,
                wih_ref, whh_ref, bl_ref, w3_ref, b3_ref,
                h0_ref, c0_ref,
                out_ref, hout_ref, cout_ref,
                gx_scr, hall_scr,
                *, seq_len, batch, state_size, hidden_pad, n_pad):
    S, B, D, HP = seq_len, batch, state_size, hidden_pad

    # ---- MLP + hoisted LSTM input projection: all timesteps in 3 MXU calls ----
    # x arrives batch-first (B, S, D); shuffle once to time-major rows (row = t*B + b)
    # so the per-step gate slices in the recurrence are contiguous sublane windows.
    x_tm = jnp.transpose(x_ref[...], (1, 0, 2)).reshape(S * B, D)
    h1 = _elu(jnp.dot(x_tm, w1_ref[...], preferred_element_type=jnp.float32) + b1_ref[...])
    h2 = _elu(jnp.dot(h1, w2_ref[...], preferred_element_type=jnp.float32) + b2_ref[...])
    # gates_x = feat @ W_ih + (b_ih + b_hh), for every timestep at once.
    gx_scr[...] = (jnp.dot(h2, wih_ref[...], preferred_element_type=jnp.float32)
                   + bl_ref[...])                       # (S*B, 4*HP), time-major rows

    # ---- LSTM recurrence: fully unrolled, h/c live in vregs ----
    h = h0_ref[...]                                     # (B, HP)
    c = c0_ref[...]
    for t in range(S):
        # Only the recurrent (B, HP) @ (HP, 4*HP) matmul sits on the serial chain.
        gates = gx_scr[pl.ds(t * B, B), :] + jnp.dot(
            h, whh_ref[...], preferred_element_type=jnp.float32)   # (B, 4*HP)
        # gate blocks are 128-lane aligned: offsets 0 / 128 / 256 / 384 (static slices)
        i_g = jax.nn.sigmoid(gates[:, 0 * HP:1 * HP])
        f_g = jax.nn.sigmoid(gates[:, 1 * HP:2 * HP])
        g_g = jnp.tanh(gates[:, 2 * HP:3 * HP])
        o_g = jax.nn.sigmoid(gates[:, 3 * HP:4 * HP])
        c = f_g * c + i_g * g_g
        h = o_g * jnp.tanh(c)
        hall_scr[pl.ds(t * B, B), :] = h                # time-major hidden history
    hout_ref[...] = h
    cout_ref[...] = c

    # ---- hoisted final linear: one MXU call + one lane-dense (unmasked) store ----
    out_tm = (jnp.dot(hall_scr[...], w3_ref[...], preferred_element_type=jnp.float32)
              + b3_ref[...])                            # (S*B, n_pad), time-major rows
    # Reorder rows t*B+b -> b*S+t so the output matches PyTorch's
    # lstm_out.contiguous().view(seq_len*batch, mid) flatten (batch-major memory order).
    out_ref[...] = jnp.transpose(out_tm.reshape(S, B, n_pad), (1, 0, 2)).reshape(B * S, n_pad)


def pad_params(p, hidden=HIDDEN):
    """Zero-pad natural-shaped params to lane-aligned kernel layouts (done once, offline)."""
    H, HP, NP = hidden, HIDDEN_PAD, N_PAD

    def pad_to(a, rows, cols):
        return jnp.pad(a, ((0, rows - a.shape[0]), (0, cols - a.shape[1])))

    def pad_gates(w):  # (R, 4H) -> (HP, 4*HP); each gate in its own 128-lane block
        r = w.shape[0]
        return jnp.pad(w.reshape(r, 4, H),
                       ((0, HP - r), (0, 0), (0, HP - H))).reshape(HP, 4 * HP)

    return {
        "w1": pad_to(p["w1"], p["w1"].shape[0], HP),
        "b1": pad_to(p["b1"], 1, HP),
        "w2": pad_to(p["w2"], HP, HP),
        "b2": pad_to(p["b2"], 1, HP),
        "wih": pad_gates(p["wih"]),
        "whh": pad_gates(p["whh"]),
        "bl": jnp.pad(p["bl"].reshape(4, H), ((0, 0), (0, HP - H))).reshape(1, 4 * HP),
        "w3": pad_to(p["w3"], HP, NP),
        "b3": pad_to(p["b3"], 1, NP),
    }


def dqn_forward(x, hs, cs, pp):
    """x: (B, S, state_size); hs, cs: (1, B, HIDDEN); pp: padded params.
    Returns (logits (B*S, 3), hs (1,B,25), cs (1,B,25))."""
    B, S, D = x.shape
    HP, NP = HIDDEN_PAD, N_PAD
    h0 = jnp.pad(hs[0], ((0, 0), (0, HP - HIDDEN)))     # padded lanes stay 0 in the kernel
    c0 = jnp.pad(cs[0], ((0, 0), (0, HP - HIDDEN)))

    kernel = functools.partial(_dqn_kernel, seq_len=S, batch=B,
                               state_size=D, hidden_pad=HP, n_pad=NP)
    vmem = pl.BlockSpec(memory_space=pltpu.MemorySpace.VMEM)

    out_pad, h_pad, c_pad = pl.pallas_call(
        kernel,
        out_shape=(
            jax.ShapeDtypeStruct((B * S, NP), jnp.float32),
            jax.ShapeDtypeStruct((B, HP), jnp.float32),
            jax.ShapeDtypeStruct((B, HP), jnp.float32),
        ),
        in_specs=[vmem] * 12,
        out_specs=(vmem, vmem, vmem),
        scratch_shapes=[
            pltpu.VMEM((S * B, 4 * HP), jnp.float32),   # hoisted input-projection gates
            pltpu.VMEM((S * B, HP), jnp.float32),       # per-step hidden states (time-major)
        ],
    )(x,
      pp["w1"], pp["b1"], pp["w2"], pp["b2"],
      pp["wih"], pp["whh"], pp["bl"],
      pp["w3"], pp["b3"],
      h0, c0)

    logits = out_pad[:, :N_ACTIONS]
    return logits, h_pad[None, :, :HIDDEN], c_pad[None, :, :HIDDEN]


def init_params(key, state_size=STATE_SIZE, hidden=HIDDEN, n_actions=N_ACTIONS):
    """Deterministic synthetic init mirroring the module's shapes & bias scheme."""
    ks = jax.random.split(key, 5)

    def unif(k, shape, fan_in):
        bound = 1.0 / jnp.sqrt(fan_in)
        return jax.random.uniform(k, shape, jnp.float32, -bound, bound)

    # Linear weights stored pre-transposed: (in, out)
    w1 = unif(ks[0], (state_size, hidden), state_size)
    w2 = unif(ks[1], (hidden, hidden), hidden)
    w3 = unif(ks[2], (hidden, n_actions), hidden)
    b1 = jnp.zeros((1, hidden), jnp.float32)   # nn.init.constant_(bias, 0)
    b2 = jnp.zeros((1, hidden), jnp.float32)
    b3 = jnp.zeros((1, n_actions), jnp.float32)

    # LSTM weights: PyTorch shape (4H, H); stored transposed (H, 4H), gate order i,f,g,o
    wih = unif(ks[3], (hidden, 4 * hidden), hidden)
    whh = unif(ks[4], (hidden, 4 * hidden), hidden)
    # bias_ih and bias_hh zeroed, then forget-gate slice [H:2H) set to 1 in each -> combined 2
    bias_ih = jnp.zeros((4 * hidden,), jnp.float32).at[hidden:2 * hidden].set(1.0)
    bias_hh = jnp.zeros((4 * hidden,), jnp.float32).at[hidden:2 * hidden].set(1.0)
    bl = (bias_ih + bias_hh)[None, :]

    return {"w1": w1, "b1": b1, "w2": w2, "b2": b2,
            "wih": wih, "whh": whh, "bl": bl, "w3": w3, "b3": b3}


def ref_forward(x, hs, cs, p):
    """Pure-JAX reference matching PyTorch semantics (unpadded params)."""
    B, S, _ = x.shape
    H = HIDDEN
    h1 = _elu(x @ p["w1"] + p["b1"])
    h2 = _elu(h1 @ p["w2"] + p["b2"])          # (B, S, H)
    h, c = hs[0], cs[0]
    outs = []
    for t in range(S):
        gates = h2[:, t, :] @ p["wih"] + h @ p["whh"] + p["bl"]
        i_g = jax.nn.sigmoid(gates[:, 0:H])
        f_g = jax.nn.sigmoid(gates[:, H:2 * H])
        g_g = jnp.tanh(gates[:, 2 * H:3 * H])
        o_g = jax.nn.sigmoid(gates[:, 3 * H:4 * H])
        c = f_g * c + i_g * g_g
        h = o_g * jnp.tanh(c)
        outs.append(h)
    lstm_out = jnp.stack(outs, axis=1)          # (B, S, H)
    logits = lstm_out.reshape(B * S, H) @ p["w3"] + p["b3"]
    return logits, h[None], c[None]


if __name__ == "__main__":
    B, S = 2, 8
    key = jax.random.PRNGKey(0)
    k_p, k_x, k_h, k_c = jax.random.split(key, 4)

    params = init_params(k_p)
    padded = pad_params(params)
    x = jax.random.normal(k_x, (B, S, STATE_SIZE), jnp.float32)
    hs = jax.random.normal(k_h, (1, B, HIDDEN), jnp.float32) * 0.1
    cs = jax.random.normal(k_c, (1, B, HIDDEN), jnp.float32) * 0.1

    fwd = jax.jit(dqn_forward)
    logits, h_out, c_out = jax.block_until_ready(fwd(x, hs, cs, padded))

    # correctness check against pure-JAX reference
    r_logits, r_h, r_c = ref_forward(x, hs, cs, params)
    assert logits.shape == (B * S, N_ACTIONS)
    assert h_out.shape == (1, B, HIDDEN) and c_out.shape == (1, B, HIDDEN)
    assert jnp.allclose(logits, r_logits, atol=1e-4, rtol=1e-4)
    assert jnp.allclose(h_out, r_h, atol=1e-4, rtol=1e-4)
    assert jnp.allclose(c_out, r_c, atol=1e-4, rtol=1e-4)

    print("KERNEL_OK")
</pallas_src>

<mosaic_0001>
module attributes {stable_mosaic.version = 11 : i64} {
  func.func @_dqn_kernel(%arg0: memref<2x8x16xf32, #tpu.memory_space<vmem>>, %arg1: memref<16x128xf32, #tpu.memory_space<vmem>>, %arg2: memref<1x128xf32, #tpu.memory_space<vmem>>, %arg3: memref<128x128xf32, #tpu.memory_space<vmem>>, %arg4: memref<1x128xf32, #tpu.memory_space<vmem>>, %arg5: memref<128x512xf32, #tpu.memory_space<vmem>>, %arg6: memref<128x512xf32, #tpu.memory_space<vmem>>, %arg7: memref<1x512xf32, #tpu.memory_space<vmem>>, %arg8: memref<128x128xf32, #tpu.memory_space<vmem>>, %arg9: memref<1x128xf32, #tpu.memory_space<vmem>>, %arg10: memref<2x128xf32, #tpu.memory_space<vmem>>, %arg11: memref<2x128xf32, #tpu.memory_space<vmem>>, %arg12: memref<16x128xf32, #tpu.memory_space<vmem>>, %arg13: memref<2x128xf32, #tpu.memory_space<vmem>>, %arg14: memref<2x128xf32, #tpu.memory_space<vmem>>, %arg15: memref<16x512xf32, #tpu.memory_space<vmem>>, %arg16: memref<16x128xf32, #tpu.memory_space<vmem>>) attributes {dimension_semantics = [], scalar_prefetch = 0 : i64, scratch_operands = 2 : i64, tpu.core_type = #tpu.core_type<tc>} {
    %c0 = arith.constant 0 : index
    %c0_0 = arith.constant 0 : index
    %c0_1 = arith.constant 0 : index
    %0 = vector.load %arg0[%c0, %c0_0, %c0_1] : memref<2x8x16xf32, #tpu.memory_space<vmem>>, vector<2x8x16xf32>
    %1 = tpu.transpose %0, [1, 0, 2] : vector<2x8x16xf32> -> vector<8x2x16xf32>
    %2 = vector.shape_cast %1 : vector<8x2x16xf32> to vector<16x16xf32>
    %c0_2 = arith.constant 0 : index
    %c0_3 = arith.constant 0 : index
    %3 = vector.load %arg1[%c0_2, %c0_3] : memref<16x128xf32, #tpu.memory_space<vmem>>, vector<16x128xf32>
    %cst = arith.constant dense<0.000000e+00> : vector<16x128xf32>
    %4 = tpu.matmul %2, %3, %cst {dimension_numbers = #tpu.dot_dimension_numbers<[1], [0], [0], [1], [0, 0, 1, 1], [], []>} : vector<16x16xf32>, vector<16x128xf32>, vector<16x128xf32> -> vector<16x128xf32>
    %c0_4 = arith.constant 0 : index
    %c0_5 = arith.constant 0 : index
    %5 = vector.load %arg2[%c0_4, %c0_5] : memref<1x128xf32, #tpu.memory_space<vmem>>, vector<1x128xf32>
    %6 = vector.broadcast %5 : vector<1x128xf32> to vector<16x128xf32>
    %7 = arith.addf %4, %6 : vector<16x128xf32>
    %cst_6 = arith.constant 0.000000e+00 : f32
    %8 = vector.broadcast %cst_6 : f32 to vector<16x128xf32>
    %9 = arith.cmpf ogt, %7, %8 : vector<16x128xf32>
    %cst_7 = arith.constant 0.000000e+00 : f32
    %10 = vector.broadcast %cst_7 : f32 to vector<16x128xf32>
    %11 = arith.minimumf %7, %10 : vector<16x128xf32>
    %12 = math.exp %11 : vector<16x128xf32>
    %cst_8 = arith.constant 1.000000e+00 : f32
    %13 = vector.broadcast %cst_8 : f32 to vector<16x128xf32>
    %14 = arith.subf %12, %13 : vector<16x128xf32>
    %15 = arith.select %9, %7, %14 : vector<16x128xi1>, vector<16x128xf32>
    %c0_9 = arith.constant 0 : index
    %c0_10 = arith.constant 0 : index
    %16 = vector.load %arg3[%c0_9, %c0_10] : memref<128x128xf32, #tpu.memory_space<vmem>>, vector<128x128xf32>
    %cst_11 = arith.constant dense<0.000000e+00> : vector<16x128xf32>
    %17 = tpu.matmul %15, %16, %cst_11 {dimension_numbers = #tpu.dot_dimension_numbers<[1], [0], [0], [1], [0, 0, 1, 1], [], []>} : vector<16x128xf32>, vector<128x128xf32>, vector<16x128xf32> -> vector<16x128xf32>
    %c0_12 = arith.constant 0 : index
    %c0_13 = arith.constant 0 : index
    %18 = vector.load %arg4[%c0_12, %c0_13] : memref<1x128xf32, #tpu.memory_space<vmem>>, vector<1x128xf32>
    %19 = vector.broadcast %18 : vector<1x128xf32> to vector<16x128xf32>
    %20 = arith.addf %17, %19 : vector<16x128xf32>
    %cst_14 = arith.constant 0.000000e+00 : f32
    %21 = vector.broadcast %cst_14 : f32 to vector<16x128xf32>
    %22 = arith.cmpf ogt, %20, %21 : vector<16x128xf32>
    %cst_15 = arith.constant 0.000000e+00 : f32
    %23 = vector.broadcast %cst_15 : f32 to vector<16x128xf32>
    %24 = arith.minimumf %20, %23 : vector<16x128xf32>
    %25 = math.exp %24 : vector<16x128xf32>
    %cst_16 = arith.constant 1.000000e+00 : f32
    %26 = vector.broadcast %cst_16 : f32 to vector<16x128xf32>
    %27 = arith.subf %25, %26 : vector<16x128xf32>
    %28 = arith.select %22, %20, %27 : vector<16x128xi1>, vector<16x128xf32>
    %c0_17 = arith.constant 0 : index
    %c0_18 = arith.constant 0 : index
    %29 = vector.load %arg5[%c0_17, %c0_18] : memref<128x512xf32, #tpu.memory_space<vmem>>, vector<128x512xf32>
    %cst_19 = arith.constant dense<0.000000e+00> : vector<16x512xf32>
    %30 = tpu.matmul %28, %29, %cst_19 {dimension_numbers = #tpu.dot_dimension_numbers<[1], [0], [0], [1], [0, 0, 1, 1], [], []>} : vector<16x128xf32>, vector<128x512xf32>, vector<16x512xf32> -> vector<16x512xf32>
    %c0_20 = arith.constant 0 : index
    %c0_21 = arith.constant 0 : index
    %31 = vector.load %arg7[%c0_20, %c0_21] : memref<1x512xf32, #tpu.memory_space<vmem>>, vector<1x512xf32>
    %32 = vector.broadcast %31 : vector<1x512xf32> to vector<16x512xf32>
    %33 = arith.addf %30, %32 : vector<16x512xf32>
    %c0_22 = arith.constant 0 : index
    %c0_23 = arith.constant 0 : index
    %34 = vector.load %arg15[%c0_22, %c0_23] : memref<16x512xf32, #tpu.memory_space<vmem>>, vector<16x512xf32>
    tpu.vector_store %arg15[%c0_22, %c0_23], %33 {strides = array<i32>} : memref<16x512xf32, #tpu.memory_space<vmem>>, vector<16x512xf32>,
    %c0_24 = arith.constant 0 : index
    %c0_25 = arith.constant 0 : index
    %35 = vector.load %arg10[%c0_24, %c0_25] : memref<2x128xf32, #tpu.memory_space<vmem>>, vector<2x128xf32>
    %c0_26 = arith.constant 0 : index
    %c0_27 = arith.constant 0 : index
    %36 = vector.load %arg11[%c0_26, %c0_27] : memref<2x128xf32, #tpu.memory_space<vmem>>, vector<2x128xf32>
    %c0_28 = arith.constant 0 : index
    %c0_29 = arith.constant 0 : index
    %37 = vector.load %arg15[%c0_28, %c0_29] : memref<16x512xf32, #tpu.memory_space<vmem>>, vector<2x512xf32>
    %c0_30 = arith.constant 0 : index
    %c0_31 = arith.constant 0 : index
    %38 = vector.load %arg6[%c0_30, %c0_31] : memref<128x512xf32, #tpu.memory_space<vmem>>, vector<128x512xf32>
    %cst_32 = arith.constant dense<0.000000e+00> : vector<2x512xf32>
    %39 = tpu.matmul %35, %38, %cst_32 {dimension_numbers = #tpu.dot_dimension_numbers<[1], [0], [0], [1], [0, 0, 1, 1], [], []>} : vector<2x128xf32>, vector<128x512xf32>, vector<2x512xf32> -> vector<2x512xf32>
    %40 = arith.addf %37, %39 : vector<2x512xf32>
    %41 = vector.extract_strided_slice %40 {offsets = [0, 0], sizes = [2, 128], strides = [1, 1]} : vector<2x512xf32> to vector<2x128xf32>
    %42 = arith.negf %41 : vector<2x128xf32>
    %43 = math.exp %42 : vector<2x128xf32>
    %cst_33 = arith.constant 1.000000e+00 : f32
    %44 = vector.broadcast %cst_33 : f32 to vector<2x128xf32>
    %45 = arith.addf %44, %43 : vector<2x128xf32>
    %46 = arith.divf %44, %45 : vector<2x128xf32>
    %47 = vector.extract_strided_slice %40 {offsets = [0, 128], sizes = [2, 128], strides = [1, 1]} : vector<2x512xf32> to vector<2x128xf32>
    %48 = arith.negf %47 : vector<2x128xf32>
    %49 = math.exp %48 : vector<2x128xf32>
    %cst_34 = arith.constant 1.000000e+00 : f32
    %50 = vector.broadcast %cst_34 : f32 to vector<2x128xf32>
    %51 = arith.addf %50, %49 : vector<2x128xf32>
    %52 = arith.divf %50, %51 : vector<2x128xf32>
    %53 = vector.extract_strided_slice %40 {offsets = [0, 256], sizes = [2, 128], strides = [1, 1]} : vector<2x512xf32> to vector<2x128xf32>
    %54 = math.tanh %53 : vector<2x128xf32>
    %55 = vector.extract_strided_slice %40 {offsets = [0, 384], sizes = [2, 128], strides = [1, 1]} : vector<2x512xf32> to vector<2x128xf32>
    %56 = arith.negf %55 : vector<2x128xf32>
    %57 = math.exp %56 : vector<2x128xf32>
    %cst_35 = arith.constant 1.000000e+00 : f32
    %58 = vector.broadcast %cst_35 : f32 to vector<2x128xf32>
    %59 = arith.addf %58, %57 : vector<2x128xf32>
    %60 = arith.divf %58, %59 : vector<2x128xf32>
    %61 = arith.mulf %52, %36 : vector<2x128xf32>
    %62 = arith.mulf %46, %54 : vector<2x128xf32>
    %63 = arith.addf %61, %62 : vector<2x128xf32>
    %64 = math.tanh %63 : vector<2x128xf32>
    %65 = arith.mulf %60, %64 : vector<2x128xf32>
    %c0_36 = arith.constant 0 : index
    %c0_37 = arith.constant 0 : index
    %66 = vector.load %arg16[%c0_36, %c0_37] : memref<16x128xf32, #tpu.memory_space<vmem>>, vector<2x128xf32>
    tpu.vector_store %arg16[%c0_36, %c0_37], %65 {strides = array<i32>} : memref<16x128xf32, #tpu.memory_space<vmem>>, vector<2x128xf32>,
    %c2 = arith.constant 2 : index
    %c0_38 = arith.constant 0 : index
    %67 = vector.load %arg15[%c2, %c0_38] : memref<16x512xf32, #tpu.memory_space<vmem>>, vector<2x512xf32>
    %c0_39 = arith.constant 0 : index
    %c0_40 = arith.constant 0 : index
    %68 = vector.load %arg6[%c0_39, %c0_40] : memref<128x512xf32, #tpu.memory_space<vmem>>, vector<128x512xf32>
    %cst_41 = arith.constant dense<0.000000e+00> : vector<2x512xf32>
    %69 = tpu.matmul %65, %68, %cst_41 {dimension_numbers = #tpu.dot_dimension_numbers<[1], [0], [0], [1], [0, 0, 1, 1], [], []>} : vector<2x128xf32>, vector<128x512xf32>, vector<2x512xf32> -> vector<2x512xf32>
    %70 = arith.addf %67, %69 : vector<2x512xf32>
    %71 = vector.extract_strided_slice %70 {offsets = [0, 0], sizes = [2, 128], strides = [1, 1]} : vector<2x512xf32> to vector<2x128xf32>
    %72 = arith.negf %71 : vector<2x128xf32>
    %73 = math.exp %72 : vector<2x128xf32>
    %cst_42 = arith.constant 1.000000e+00 : f32
    %74 = vector.broadcast %cst_42 : f32 to vector<2x128xf32>
    %75 = arith.addf %74, %73 : vector<2x128xf32>
    %76 = arith.divf %74, %75 : vector<2x128xf32>
    %77 = vector.extract_strided_slice %70 {offsets = [0, 128], sizes = [2, 128], strides = [1, 1]} : vector<2x512xf32> to vector<2x128xf32>
    %78 = arith.negf %77 : vector<2x128xf32>
    %79 = math.exp %78 : vector<2x128xf32>
    %cst_43 = arith.constant 1.000000e+00 : f32
    %80 = vector.broadcast %cst_43 : f32 to vector<2x128xf32>
    %81 = arith.addf %80, %79 : vector<2x128xf32>
    %82 = arith.divf %80, %81 : vector<2x128xf32>
    %83 = vector.extract_strided_slice %70 {offsets = [0, 256], sizes = [2, 128], strides = [1, 1]} : vector<2x512xf32> to vector<2x128xf32>
    %84 = math.tanh %83 : vector<2x128xf32>
    %85 = vector.extract_strided_slice %70 {offsets = [0, 384], sizes = [2, 128], strides = [1, 1]} : vector<2x512xf32> to vector<2x128xf32>
    %86 = arith.negf %85 : vector<2x128xf32>
    %87 = math.exp %86 : vector<2x128xf32>
    %cst_44 = arith.constant 1.000000e+00 : f32
    %88 = vector.broadcast %cst_44 : f32 to vector<2x128xf32>
    %89 = arith.addf %88, %87 : vector<2x128xf32>
    %90 = arith.divf %88, %89 : vector<2x128xf32>
    %91 = arith.mulf %82, %63 : vector<2x128xf32>
    %92 = arith.mulf %76, %84 : vector<2x128xf32>
    %93 = arith.addf %91, %92 : vector<2x128xf32>
    %94 = math.tanh %93 : vector<2x128xf32>
    %95 = arith.mulf %90, %94 : vector<2x128xf32>
    %c2_45 = arith.constant 2 : index
    %c0_46 = arith.constant 0 : index
    %96 = vector.load %arg16[%c2_45, %c0_46] : memref<16x128xf32, #tpu.memory_space<vmem>>, vector<2x128xf32>
    tpu.vector_store %arg16[%c2_45, %c0_46], %95 {strides = array<i32>} : memref<16x128xf32, #tpu.memory_space<vmem>>, vector<2x128xf32>,
    %c4 = arith.constant 4 : index
    %c0_47 = arith.constant 0 : index
    %97 = vector.load %arg15[%c4, %c0_47] : memref<16x512xf32, #tpu.memory_space<vmem>>, vector<2x512xf32>
    %c0_48 = arith.constant 0 : index
    %c0_49 = arith.constant 0 : index
    %98 = vector.load %arg6[%c0_48, %c0_49] : memref<128x512xf32, #tpu.memory_space<vmem>>, vector<128x512xf32>
    %cst_50 = arith.constant dense<0.000000e+00> : vector<2x512xf32>
    %99 = tpu.matmul %95, %98, %cst_50 {dimension_numbers = #tpu.dot_dimension_numbers<[1], [0], [0], [1], [0, 0, 1, 1], [], []>} : vector<2x128xf32>, vector<128x512xf32>, vector<2x512xf32> -> vector<2x512xf32>
    %100 = arith.addf %97, %99 : vector<2x512xf32>
    %101 = vector.extract_strided_slice %100 {offsets = [0, 0], sizes = [2, 128], strides = [1, 1]} : vector<2x512xf32> to vector<2x128xf32>
    %102 = arith.negf %101 : vector<2x128xf32>
    %103 = math.exp %102 : vector<2x128xf32>
    %cst_51 = arith.constant 1.000000e+00 : f32
    %104 = vector.broadcast %cst_51 : f32 to vector<2x128xf32>
    %105 = arith.addf %104, %103 : vector<2x128xf32>
    %106 = arith.divf %104, %105 : vector<2x128xf32>
    %107 = vector.extract_strided_slice %100 {offsets = [0, 128], sizes = [2, 128], strides = [1, 1]} : vector<2x512xf32> to vector<2x128xf32>
    %108 = arith.negf %107 : vector<2x128xf32>
    %109 = math.exp %108 : vector<2x128xf32>
    %cst_52 = arith.constant 1.000000e+00 : f32
    %110 = vector.broadcast %cst_52 : f32 to vector<2x128xf32>
    %111 = arith.addf %110, %109 : vector<2x128xf32>
    %112 = arith.divf %110, %111 : vector<2x128xf32>
    %113 = vector.extract_strided_slice %100 {offsets = [0, 256], sizes = [2, 128], strides = [1, 1]} : vector<2x512xf32> to vector<2x128xf32>
    %114 = math.tanh %113 : vector<2x128xf32>
    %115 = vector.extract_strided_slice %100 {offsets = [0, 384], sizes = [2, 128], strides = [1, 1]} : vector<2x512xf32> to vector<2x128xf32>
    %116 = arith.negf %115 : vector<2x128xf32>
    %117 = math.exp %116 : vector<2x128xf32>
    %cst_53 = arith.constant 1.000000e+00 : f32
    %118 = vector.broadcast %cst_53 : f32 to vector<2x128xf32>
    %119 = arith.addf %118, %117 : vector<2x128xf32>
    %120 = arith.divf %118, %119 : vector<2x128xf32>
    %121 = arith.mulf %112, %93 : vector<2x128xf32>
    %122 = arith.mulf %106, %114 : vector<2x128xf32>
    %123 = arith.addf %121, %122 : vector<2x128xf32>
    %124 = math.tanh %123 : vector<2x128xf32>
    %125 = arith.mulf %120, %124 : vector<2x128xf32>
    %c4_54 = arith.constant 4 : index
    %c0_55 = arith.constant 0 : index
    %126 = vector.load %arg16[%c4_54, %c0_55] : memref<16x128xf32, #tpu.memory_space<vmem>>, vector<2x128xf32>
    tpu.vector_store %arg16[%c4_54, %c0_55], %125 {strides = array<i32>} : memref<16x128xf32, #tpu.memory_space<vmem>>, vector<2x128xf32>,
    %c6 = arith.constant 6 : index
    %c0_56 = arith.constant 0 : index
    %127 = vector.load %arg15[%c6, %c0_56] : memref<16x512xf32, #tpu.memory_space<vmem>>, vector<2x512xf32>
    %c0_57 = arith.constant 0 : index
    %c0_58 = arith.constant 0 : index
    %128 = vector.load %arg6[%c0_57, %c0_58] : memref<128x512xf32, #tpu.memory_space<vmem>>, vector<128x512xf32>
    %cst_59 = arith.constant dense<0.000000e+00> : vector<2x512xf32>
    %129 = tpu.matmul %125, %128, %cst_59 {dimension_numbers = #tpu.dot_dimension_numbers<[1], [0], [0], [1], [0, 0, 1, 1], [], []>} : vector<2x128xf32>, vector<128x512xf32>, vector<2x512xf32> -> vector<2x512xf32>
    %130 = arith.addf %127, %129 : vector<2x512xf32>
    %131 = vector.extract_strided_slice %130 {offsets = [0, 0], sizes = [2, 128], strides = [1, 1]} : vector<2x512xf32> to vector<2x128xf32>
    %132 = arith.negf %131 : vector<2x128xf32>
    %133 = math.exp %132 : vector<2x128xf32>
    %cst_60 = arith.constant 1.000000e+00 : f32
    %134 = vector.broadcast %cst_60 : f32 to vector<2x128xf32>
    %135 = arith.addf %134, %133 : vector<2x128xf32>
    %136 = arith.divf %134, %135 : vector<2x128xf32>
    %137 = vector.extract_strided_slice %130 {offsets = [0, 128], sizes = [2, 128], strides = [1, 1]} : vector<2x512xf32> to vector<2x128xf32>
    %138 = arith.negf %137 : vector<2x128xf32>
    %139 = math.exp %138 : vector<2x128xf32>
    %cst_61 = arith.constant 1.000000e+00 : f32
    %140 = vector.broadcast %cst_61 : f32 to vector<2x128xf32>
    %141 = arith.addf %140, %139 : vector<2x128xf32>
    %142 = arith.divf %140, %141 : vector<2x128xf32>
    %143 = vector.extract_strided_slice %130 {offsets = [0, 256], sizes = [2, 128], strides = [1, 1]} : vector<2x512xf32> to vector<2x128xf32>
    %144 = math.tanh %143 : vector<2x128xf32>
    %145 = vector.extract_strided_slice %130 {offsets = [0, 384], sizes = [2, 128], strides = [1, 1]} : vector<2x512xf32> to vector<2x128xf32>
    %146 = arith.negf %145 : vector<2x128xf32>
    %147 = math.exp %146 : vector<2x128xf32>
    %cst_62 = arith.constant 1.000000e+00 : f32
    %148 = vector.broadcast %cst_62 : f32 to vector<2x128xf32>
    %149 = arith.addf %148, %147 : vector<2x128xf32>
    %150 = arith.divf %148, %149 : vector<2x128xf32>
    %151 = arith.mulf %142, %123 : vector<2x128xf32>
    %152 = arith.mulf %136, %144 : vector<2x128xf32>
    %153 = arith.addf %151, %152 : vector<2x128xf32>
    %154 = math.tanh %153 : vector<2x128xf32>
    %155 = arith.mulf %150, %154 : vector<2x128xf32>
    %c6_63 = arith.constant 6 : index
    %c0_64 = arith.constant 0 : index
    %156 = vector.load %arg16[%c6_63, %c0_64] : memref<16x128xf32, #tpu.memory_space<vmem>>, vector<2x128xf32>
    tpu.vector_store %arg16[%c6_63, %c0_64], %155 {strides = array<i32>} : memref<16x128xf32, #tpu.memory_space<vmem>>, vector<2x128xf32>,
    %c8 = arith.constant 8 : index
    %c0_65 = arith.constant 0 : index
    %157 = vector.load %arg15[%c8, %c0_65] : memref<16x512xf32, #tpu.memory_space<vmem>>, vector<2x512xf32>
    %c0_66 = arith.constant 0 : index
    %c0_67 = arith.constant 0 : index
    %158 = vector.load %arg6[%c0_66, %c0_67] : memref<128x512xf32, #tpu.memory_space<vmem>>, vector<128x512xf32>
    %cst_68 = arith.constant dense<0.000000e+00> : vector<2x512xf32>
    %159 = tpu.matmul %155, %158, %cst_68 {dimension_numbers = #tpu.dot_dimension_numbers<[1], [0], [0], [1], [0, 0, 1, 1], [], []>} : vector<2x128xf32>, vector<128x512xf32>, vector<2x512xf32> -> vector<2x512xf32>
    %160 = arith.addf %157, %159 : vector<2x512xf32>
    %161 = vector.extract_strided_slice %160 {offsets = [0, 0], sizes = [2, 128], strides = [1, 1]} : vector<2x512xf32> to vector<2x128xf32>
    %162 = arith.negf %161 : vector<2x128xf32>
    %163 = math.exp %162 : vector<2x128xf32>
    %cst_69 = arith.constant 1.000000e+00 : f32
    %164 = vector.broadcast %cst_69 : f32 to vector<2x128xf32>
    %165 = arith.addf %164, %163 : vector<2x128xf32>
    %166 = arith.divf %164, %165 : vector<2x128xf32>
    %167 = vector.extract_strided_slice %160 {offsets = [0, 128], sizes = [2, 128], strides = [1, 1]} : vector<2x512xf32> to vector<2x128xf32>
    %168 = arith.negf %167 : vector<2x128xf32>
    %169 = math.exp %168 : vector<2x128xf32>
    %cst_70 = arith.constant 1.000000e+00 : f32
    %170 = vector.broadcast %cst_70 : f32 to vector<2x128xf32>
    %171 = arith.addf %170, %169 : vector<2x128xf32>
    %172 = arith.divf %170, %171 : vector<2x128xf32>
    %173 = vector.extract_strided_slice %160 {offsets = [0, 256], sizes = [2, 128], strides = [1, 1]} : vector<2x512xf32> to vector<2x128xf32>
    %174 = math.tanh %173 : vector<2x128xf32>
    %175 = vector.extract_strided_slice %160 {offsets = [0, 384], sizes = [2, 128], strides = [1, 1]} : vector<2x512xf32> to vector<2x128xf32>
    %176 = arith.negf %175 : vector<2x128xf32>
    %177 = math.exp %176 : vector<2x128xf32>
    %cst_71 = arith.constant 1.000000e+00 : f32
    %178 = vector.broadcast %cst_71 : f32 to vector<2x128xf32>
    %179 = arith.addf %178, %177 : vector<2x128xf32>
    %180 = arith.divf %178, %179 : vector<2x128xf32>
    %181 = arith.mulf %172, %153 : vector<2x128xf32>
    %182 = arith.mulf %166, %174 : vector<2x128xf32>
    %183 = arith.addf %181, %182 : vector<2x128xf32>
    %184 = math.tanh %183 : vector<2x128xf32>
    %185 = arith.mulf %180, %184 : vector<2x128xf32>
    %c8_72 = arith.constant 8 : index
    %c0_73 = arith.constant 0 : index
    %186 = vector.load %arg16[%c8_72, %c0_73] : memref<16x128xf32, #tpu.memory_space<vmem>>, vector<2x128xf32>
    tpu.vector_store %arg16[%c8_72, %c0_73], %185 {strides = array<i32>} : memref<16x128xf32, #tpu.memory_space<vmem>>, vector<2x128xf32>,
    %c10 = arith.constant 10 : index
    %c0_74 = arith.constant 0 : index
    %187 = vector.load %arg15[%c10, %c0_74] : memref<16x512xf32, #tpu.memory_space<vmem>>, vector<2x512xf32>
    %c0_75 = arith.constant 0 : index
    %c0_76 = arith.constant 0 : index
    %188 = vector.load %arg6[%c0_75, %c0_76] : memref<128x512xf32, #tpu.memory_space<vmem>>, vector<128x512xf32>
    %cst_77 = arith.constant dense<0.000000e+00> : vector<2x512xf32>
    %189 = tpu.matmul %185, %188, %cst_77 {dimension_numbers = #tpu.dot_dimension_numbers<[1], [0], [0], [1], [0, 0, 1, 1], [], []>} : vector<2x128xf32>, vector<128x512xf32>, vector<2x512xf32> -> vector<2x512xf32>
    %190 = arith.addf %187, %189 : vector<2x512xf32>
    %191 = vector.extract_strided_slice %190 {offsets = [0, 0], sizes = [2, 128], strides = [1, 1]} : vector<2x512xf32> to vector<2x128xf32>
    %192 = arith.negf %191 : vector<2x128xf32>
    %193 = math.exp %192 : vector<2x128xf32>
    %cst_78 = arith.constant 1.000000e+00 : f32
    %194 = vector.broadcast %cst_78 : f32 to vector<2x128xf32>
    %195 = arith.addf %194, %193 : vector<2x128xf32>
    %196 = arith.divf %194, %195 : vector<2x128xf32>
    %197 = vector.extract_strided_slice %190 {offsets = [0, 128], sizes = [2, 128], strides = [1, 1]} : vector<2x512xf32> to vector<2x128xf32>
    %198 = arith.negf %197 : vector<2x128xf32>
    %199 = math.exp %198 : vector<2x128xf32>
    %cst_79 = arith.constant 1.000000e+00 : f32
    %200 = vector.broadcast %cst_79 : f32 to vector<2x128xf32>
    %201 = arith.addf %200, %199 : vector<2x128xf32>
    %202 = arith.divf %200, %201 : vector<2x128xf32>
    %203 = vector.extract_strided_slice %190 {offsets = [0, 256], sizes = [2, 128], strides = [1, 1]} : vector<2x512xf32> to vector<2x128xf32>
    %204 = math.tanh %203 : vector<2x128xf32>
    %205 = vector.extract_strided_slice %190 {offsets = [0, 384], sizes = [2, 128], strides = [1, 1]} : vector<2x512xf32> to vector<2x128xf32>
    %206 = arith.negf %205 : vector<2x128xf32>
    %207 = math.exp %206 : vector<2x128xf32>
    %cst_80 = arith.constant 1.000000e+00 : f32
    %208 = vector.broadcast %cst_80 : f32 to vector<2x128xf32>
    %209 = arith.addf %208, %207 : vector<2x128xf32>
    %210 = arith.divf %208, %209 : vector<2x128xf32>
    %211 = arith.mulf %202, %183 : vector<2x128xf32>
    %212 = arith.mulf %196, %204 : vector<2x128xf32>
    %213 = arith.addf %211, %212 : vector<2x128xf32>
    %214 = math.tanh %213 : vector<2x128xf32>
    %215 = arith.mulf %210, %214 : vector<2x128xf32>
    %c10_81 = arith.constant 10 : index
    %c0_82 = arith.constant 0 : index
    %216 = vector.load %arg16[%c10_81, %c0_82] : memref<16x128xf32, #tpu.memory_space<vmem>>, vector<2x128xf32>
    tpu.vector_store %arg16[%c10_81, %c0_82], %215 {strides = array<i32>} : memref<16x128xf32, #tpu.memory_space<vmem>>, vector<2x128xf32>,
    %c12 = arith.constant 12 : index
    %c0_83 = arith.constant 0 : index
    %217 = vector.load %arg15[%c12, %c0_83] : memref<16x512xf32, #tpu.memory_space<vmem>>, vector<2x512xf32>
    %c0_84 = arith.constant 0 : index
    %c0_85 = arith.constant 0 : index
    %218 = vector.load %arg6[%c0_84, %c0_85] : memref<128x512xf32, #tpu.memory_space<vmem>>, vector<128x512xf32>
    %cst_86 = arith.constant dense<0.000000e+00> : vector<2x512xf32>
    %219 = tpu.matmul %215, %218, %cst_86 {dimension_numbers = #tpu.dot_dimension_numbers<[1], [0], [0], [1], [0, 0, 1, 1], [], []>} : vector<2x128xf32>, vector<128x512xf32>, vector<2x512xf32> -> vector<2x512xf32>
    %220 = arith.addf %217, %219 : vector<2x512xf32>
    %221 = vector.extract_strided_slice %220 {offsets = [0, 0], sizes = [2, 128], strides = [1, 1]} : vector<2x512xf32> to vector<2x128xf32>
    %222 = arith.negf %221 : vector<2x128xf32>
    %223 = math.exp %222 : vector<2x128xf32>
    %cst_87 = arith.constant 1.000000e+00 : f32
    %224 = vector.broadcast %cst_87 : f32 to vector<2x128xf32>
    %225 = arith.addf %224, %223 : vector<2x128xf32>
    %226 = arith.divf %224, %225 : vector<2x128xf32>
    %227 = vector.extract_strided_slice %220 {offsets = [0, 128], sizes = [2, 128], strides = [1, 1]} : vector<2x512xf32> to vector<2x128xf32>
    %228 = arith.negf %227 : vector<2x128xf32>
    %229 = math.exp %228 : vector<2x128xf32>
    %cst_88 = arith.constant 1.000000e+00 : f32
    %230 = vector.broadcast %cst_88 : f32 to vector<2x128xf32>
    %231 = arith.addf %230, %229 : vector<2x128xf32>
    %232 = arith.divf %230, %231 : vector<2x128xf32>
    %233 = vector.extract_strided_slice %220 {offsets = [0, 256], sizes = [2, 128], strides = [1, 1]} : vector<2x512xf32> to vector<2x128xf32>
    %234 = math.tanh %233 : vector<2x128xf32>
    %235 = vector.extract_strided_slice %220 {offsets = [0, 384], sizes = [2, 128], strides = [1, 1]} : vector<2x512xf32> to vector<2x128xf32>
    %236 = arith.negf %235 : vector<2x128xf32>
    %237 = math.exp %236 : vector<2x128xf32>
    %cst_89 = arith.constant 1.000000e+00 : f32
    %238 = vector.broadcast %cst_89 : f32 to vector<2x128xf32>
    %239 = arith.addf %238, %237 : vector<2x128xf32>
    %240 = arith.divf %238, %239 : vector<2x128xf32>
    %241 = arith.mulf %232, %213 : vector<2x128xf32>
    %242 = arith.mulf %226, %234 : vector<2x128xf32>
    %243 = arith.addf %241, %242 : vector<2x128xf32>
    %244 = math.tanh %243 : vector<2x128xf32>
    %245 = arith.mulf %240, %244 : vector<2x128xf32>
    %c12_90 = arith.constant 12 : index
    %c0_91 = arith.constant 0 : index
    %246 = vector.load %arg16[%c12_90, %c0_91] : memref<16x128xf32, #tpu.memory_space<vmem>>, vector<2x128xf32>
    tpu.vector_store %arg16[%c12_90, %c0_91], %245 {strides = array<i32>} : memref<16x128xf32, #tpu.memory_space<vmem>>, vector<2x128xf32>,
    %c14 = arith.constant 14 : index
    %c0_92 = arith.constant 0 : index
    %247 = vector.load %arg15[%c14, %c0_92] : memref<16x512xf32, #tpu.memory_space<vmem>>, vector<2x512xf32>
    %c0_93 = arith.constant 0 : index
    %c0_94 = arith.constant 0 : index
    %248 = vector.load %arg6[%c0_93, %c0_94] : memref<128x512xf32, #tpu.memory_space<vmem>>, vector<128x512xf32>
    %cst_95 = arith.constant dense<0.000000e+00> : vector<2x512xf32>
    %249 = tpu.matmul %245, %248, %cst_95 {dimension_numbers = #tpu.dot_dimension_numbers<[1], [0], [0], [1], [0, 0, 1, 1], [], []>} : vector<2x128xf32>, vector<128x512xf32>, vector<2x512xf32> -> vector<2x512xf32>
    %250 = arith.addf %247, %249 : vector<2x512xf32>
    %251 = vector.extract_strided_slice %250 {offsets = [0, 0], sizes = [2, 128], strides = [1, 1]} : vector<2x512xf32> to vector<2x128xf32>
    %252 = arith.negf %251 : vector<2x128xf32>
    %253 = math.exp %252 : vector<2x128xf32>
    %cst_96 = arith.constant 1.000000e+00 : f32
    %254 = vector.broadcast %cst_96 : f32 to vector<2x128xf32>
    %255 = arith.addf %254, %253 : vector<2x128xf32>
    %256 = arith.divf %254, %255 : vector<2x128xf32>
    %257 = vector.extract_strided_slice %250 {offsets = [0, 128], sizes = [2, 128], strides = [1, 1]} : vector<2x512xf32> to vector<2x128xf32>
    %258 = arith.negf %257 : vector<2x128xf32>
    %259 = math.exp %258 : vector<2x128xf32>
    %cst_97 = arith.constant 1.000000e+00 : f32
    %260 = vector.broadcast %cst_97 : f32 to vector<2x128xf32>
    %261 = arith.addf %260, %259 : vector<2x128xf32>
    %262 = arith.divf %260, %261 : vector<2x128xf32>
    %263 = vector.extract_strided_slice %250 {offsets = [0, 256], sizes = [2, 128], strides = [1, 1]} : vector<2x512xf32> to vector<2x128xf32>
    %264 = math.tanh %263 : vector<2x128xf32>
    %265 = vector.extract_strided_slice %250 {offsets = [0, 384], sizes = [2, 128], strides = [1, 1]} : vector<2x512xf32> to vector<2x128xf32>
    %266 = arith.negf %265 : vector<2x128xf32>
    %267 = math.exp %266 : vector<2x128xf32>
    %cst_98 = arith.constant 1.000000e+00 : f32
    %268 = vector.broadcast %cst_98 : f32 to vector<2x128xf32>
    %269 = arith.addf %268, %267 : vector<2x128xf32>
    %270 = arith.divf %268, %269 : vector<2x128xf32>
    %271 = arith.mulf %262, %243 : vector<2x128xf32>
    %272 = arith.mulf %256, %264 : vector<2x128xf32>
    %273 = arith.addf %271, %272 : vector<2x128xf32>
    %274 = math.tanh %273 : vector<2x128xf32>
    %275 = arith.mulf %270, %274 : vector<2x128xf32>
    %c14_99 = arith.constant 14 : index
    %c0_100 = arith.constant 0 : index
    %276 = vector.load %arg16[%c14_99, %c0_100] : memref<16x128xf32, #tpu.memory_space<vmem>>, vector<2x128xf32>
    tpu.vector_store %arg16[%c14_99, %c0_100], %275 {strides = array<i32>} : memref<16x128xf32, #tpu.memory_space<vmem>>, vector<2x128xf32>,
    %c0_101 = arith.constant 0 : index
    %c0_102 = arith.constant 0 : index
    %277 = vector.load %arg13[%c0_101, %c0_102] : memref<2x128xf32, #tpu.memory_space<vmem>>, vector<2x128xf32>
    tpu.vector_store %arg13[%c0_101, %c0_102], %275 {strides = array<i32>} : memref<2x128xf32, #tpu.memory_space<vmem>>, vector<2x128xf32>,
    %c0_103 = arith.constant 0 : index
    %c0_104 = arith.constant 0 : index
    %278 = vector.load %arg14[%c0_103, %c0_104] : memref<2x128xf32, #tpu.memory_space<vmem>>, vector<2x128xf32>
    tpu.vector_store %arg14[%c0_103, %c0_104], %273 {strides = array<i32>} : memref<2x128xf32, #tpu.memory_space<vmem>>, vector<2x128xf32>,
    %c0_105 = arith.constant 0 : index
    %c0_106 = arith.constant 0 : index
    %279 = vector.load %arg16[%c0_105, %c0_106] : memref<16x128xf32, #tpu.memory_space<vmem>>, vector<16x128xf32>
    %c0_107 = arith.constant 0 : index
    %c0_108 = arith.constant 0 : index
    %280 = vector.load %arg8[%c0_107, %c0_108] : memref<128x128xf32, #tpu.memory_space<vmem>>, vector<128x128xf32>
    %cst_109 = arith.constant dense<0.000000e+00> : vector<16x128xf32>
    %281 = tpu.matmul %279, %280, %cst_109 {dimension_numbers = #tpu.dot_dimension_numbers<[1], [0], [0], [1], [0, 0, 1, 1], [], []>} : vector<16x128xf32>, vector<128x128xf32>, vector<16x128xf32> -> vector<16x128xf32>
    %c0_110 = arith.constant 0 : index
    %c0_111 = arith.constant 0 : index
    %282 = vector.load %arg9[%c0_110, %c0_111] : memref<1x128xf32, #tpu.memory_space<vmem>>, vector<1x128xf32>
    %283 = vector.broadcast %282 : vector<1x128xf32> to vector<16x128xf32>
    %284 = arith.addf %281, %283 : vector<16x128xf32>
    %285 = vector.shape_cast %284 : vector<16x128xf32> to vector<8x2x128xf32>
    %286 = tpu.transpose %285, [1, 0, 2] : vector<8x2x128xf32> -> vector<2x8x128xf32>
    %287 = vector.shape_cast %286 : vector<2x8x128xf32> to vector<16x128xf32>
    %c0_112 = arith.constant 0 : index
    %c0_113 = arith.constant 0 : index
    %288 = vector.load %arg12[%c0_112, %c0_113] : memref<16x128xf32, #tpu.memory_space<vmem>>, vector<16x128xf32>
    tpu.vector_store %arg12[%c0_112, %c0_113], %287 {strides = array<i32>} : memref<16x128xf32, #tpu.memory_space<vmem>>, vector<16x128xf32>,
    return
  }
}

</mosaic_0001>

<bundles_post_ra>
// kernel: dqn_forward.1
= control target key start
LH: loop header
LB: loop body
LE: loop exit
PB: predicated region body
PF: predicated region fallthrough
CT: control target
= control target key end

     0   :  { %20 = vsyncpa [#allocation5], 0  ;;  %s4743_s0 = inlined_call_operand.vmem [shape: f32[2,8,16], index: 0, kind: input, shape index: {}]   ;;  %s4744_s1 = inlined_call_operand.vmem [shape: f32[16,128], index: 1, kind: input, shape index: {}]   ;;  %s4745_s2 = inlined_call_operand.hbm [shape: f32[1,128], index: 2, kind: input, shape index: {}]   ;;  %s4746_s3 = inlined_call_operand.hbm [shape: f32[128,128], index: 3, kind: input, shape index: {}]   ;;  %s4747_s4 = inlined_call_operand.hbm [shape: f32[1,128], index: 4, kind: input, shape index: {}]   ;;  %s4748_s5 = inlined_call_operand.hbm [shape: f32[128,512], index: 5, kind: input, shape index: {}]   ;;  %s4749_s6 = inlined_call_operand.hbm [shape: f32[128,512], index: 6, kind: input, shape index: {}]   ;;  %s4750_s7 = inlined_call_operand.vmem [shape: f32[1,512], index: 7, kind: input, shape index: {}]   ;;  %s4751_s8 = inlined_call_operand.hbm [shape: f32[128,128], index: 8, kind: input, shape index: {}]   ;;  %s4752_s9 = inlined_call_operand.hbm [shape: f32[1,128], index: 9, kind: input, shape index: {}]   ;;  %s4753_s10 = inlined_call_operand.vmem [shape: f32[2,128], index: 10, kind: input, shape index: {}]   ;;  %s4754_s11 = inlined_call_operand.vmem [shape: f32[2,128], index: 11, kind: input, shape index: {}]   ;;  %s4755_s12 = inlined_call_operand.vmem [shape: f32[16,128], index: 12, kind: output, shape index: {0}]   ;;  %s4756_s13 = inlined_call_operand.vmem [shape: f32[2,128], index: 13, kind: output, shape index: {1}]   ;;  %s4757_s14 = inlined_call_operand.vmem [shape: f32[2,128], index: 14, kind: output, shape index: {2}]  }
   0x1   :  { %21 = vsyncpa [#allocation7], 0 }
   0x2   :  { %22 = vsyncpa [#allocation10], 0 }
   0x3   :  { %23 = vsyncpa [#allocation13], 0  ;;  %s4076_s29 = smov [#allocation6]   ;;  %s3914_s17 = scalar_lea.hbm %s4746_s3, 2048 }
   0x4   :  { %s43_s30 = sshll.u32 %s4076_s29, 4  ;;  %p3915_p0 = scmp.ne.s32.totalorder %s4746_s3, %s3914_s17  ;;  %s44_s30 = int_to_ptr.vmem [resolvable:$true] %s43_s30 }
   0x5   :  { %p3918_p1 = scmp.lt.u32.totalorder %s3914_s17, %s4746_s3 }
   0x7   :  { %p3920_p2 = pnand %p3918_p1, %p3915_p0 }
   0x9   :  { %3923 = shalt.err (!%p3920_p2)
}
   0xa   :  { %s3924_s22 = scalar_lea.vmem %s44_s30, 2048  ;;  %p3929_p4 = scmp.lt.s32.totalorder %s44_s30, %s44_s30 }
   0xb   :  { %p3925_p3 = scmp.ne.s32.totalorder %s44_s30, %s3924_s22  ;;  %p3930_p5 = scmp.lt.s32.totalorder %s3924_s22, %s3924_s22 }
   0xd   :  { %p3931_p6 = por %p3930_p5, %p3929_p4 }
   0xf   :  { %p3932_p7 = pnand %p3931_p6, %p3925_p3 }
  0x11   :  { %3935 = shalt.err (!%p3932_p7)
}
  0x12   :  { %s4758_s23 = smov 128   ;;  %s4078_s24 = smov 8  }
  0x13   :  { %49 = dma.hbm_to_vmem [thread:$0]  %s4746_s3, 2048, %s44_s30, [#allocation7], %s4758_s23, %s4758_s23, %s4078_s24  }
  0x14   :  { %s4079_s27 = smov [#allocation9]   ;;  %s3936_s16 = scalar_lea.hbm %s4748_s5, 8192 }
  0x15   :  { %s65_s28 = sshll.u32 %s4079_s27, 4  ;;  %p3937_p8 = scmp.ne.s32.totalorder %s4748_s5, %s3936_s16  ;;  %s66_s28 = int_to_ptr.vmem [resolvable:$true] %s65_s28 }
  0x16   :  { %p3940_p9 = scmp.lt.u32.totalorder %s3936_s16, %s4748_s5 }
  0x18   :  { %p3942_p10 = pnand %p3940_p9, %p3937_p8 }
  0x1a   :  { %3945 = shalt.err (!%p3942_p10)
}
  0x1b   :  { %s3946_s21 = scalar_lea.vmem %s66_s28, 8192  ;;  %p3951_p12 = scmp.lt.s32.totalorder %s66_s28, %s66_s28 }
  0x1c   :  { %p3947_p11 = scmp.ne.s32.totalorder %s66_s28, %s3946_s21  ;;  %p3952_p13 = scmp.lt.s32.totalorder %s3946_s21, %s3946_s21 }
  0x1e   :  { %p3953_p0 = por %p3952_p13, %p3951_p12 }
  0x20   :  { %p3954_p1 = pnand %p3953_p0, %p3947_p11 }
  0x22   :  { %3957 = shalt.err (!%p3954_p1)
}
  0x23   :  { %s4080_s3 = smov 512   ;;  %s4081_s30 = smov 32  }
  0x24   :  { %71 = dma.hbm_to_vmem [thread:$0]  %s4748_s5, 8192, %s66_s28, [#allocation10], %s4080_s3, %s4080_s3, %s4081_s30  }
  0x25   :  { %s4082_s26 = smov [#allocation12]   ;;  %s4083_s29 = smov [#allocation4]  }
  0x26   :  { %s91_s27 = sshll.u32 %s4082_s26, 4  ;;  %s34_s15 = sshll.u32 %s4083_s29, 4  ;;  %s92_s27 = int_to_ptr.vmem [resolvable:$true] %s91_s27  ;;  %s35_s15 = int_to_ptr.vmem [resolvable:$true] %s34_s15 }
  0x27   :  { %s3958_s18 = scalar_lea.hbm %s4751_s8, 2048 }
  0x28   :  { %p3959_p2 = scmp.ne.s32.totalorder %s4751_s8, %s3958_s18  ;;  %p3962_p3 = scmp.lt.u32.totalorder %s3958_s18, %s4751_s8 }
  0x2a   :  { %p3964_p4 = pnand %p3962_p3, %p3959_p2 }
  0x2c   :  { %3967 = shalt.err (!%p3964_p4)
}
  0x2d   :  { %s3968_s5 = scalar_lea.vmem %s92_s27, 2048  ;;  %p3973_p6 = scmp.lt.s32.totalorder %s92_s27, %s92_s27 }
  0x2e   :  { %p3969_p5 = scmp.ne.s32.totalorder %s92_s27, %s3968_s5  ;;  %p3974_p7 = scmp.lt.s32.totalorder %s3968_s5, %s3968_s5 }
  0x30   :  { %p3975_p8 = por %p3974_p7, %p3973_p6 }
  0x32   :  { %p3976_p9 = pnand %p3975_p8, %p3969_p5 }
  0x34   :  { %3979 = shalt.err (!%p3976_p9)
}
  0x35   :  { %s4759_s28 = smov 128   ;;  %s3980_s23 = scalar_lea.hbm %s4745_s2, 16 }
  0x36   :  { %97 = dma.hbm_to_vmem [thread:$0]  %s4751_s8, 2048, %s92_s27, [#allocation13], %s4759_s28, %s4759_s28, %s4078_s24  }
  0x37   :  { %p3981_p10 = scmp.ne.s32.totalorder %s4745_s2, %s3980_s23  ;;  %p3984_p11 = scmp.lt.u32.totalorder %s3980_s23, %s4745_s2 }
  0x39   :  { %p3986_p12 = pnand %p3984_p11, %p3981_p10 }
  0x3b   :  { %3989 = shalt.err (!%p3986_p12)
}
  0x3c   :  { %s3990_s20 = scalar_lea.vmem %s35_s15, 16  ;;  %s3994_s21 = scalar_lea.vmem %s35_s15, 32 }
  0x3d   :  { %p3991_p13 = scmp.ne.s32.totalorder %s35_s15, %s3990_s20  ;;  %p3995_p0 = scmp.lt.s32.totalorder %s35_s15, %s35_s15 }
  0x3e   :  { %p3996_p1 = scmp.lt.s32.totalorder %s3994_s21, %s3990_s20 }
  0x40   :  { %p3997_p2 = por %p3996_p1, %p3995_p0 }
  0x42   :  { %p3998_p3 = pnand %p3997_p2, %p3991_p13 }
  0x44   :  { %4001 = shalt.err (!%p3998_p3)
}
  0x45   :  { %37 = dma.hbm_to_vmem [thread:$0]  %s4745_s2, 16, %s35_s15, [#allocation5]  }
  0x46   :  { %s4084_s27 = smov [#allocation8]   ;;  %s4085_s28 = smov [#allocation11]  }
  0x47   :  { %s56_s5 = sshll.u32 %s4084_s27, 4  ;;  %s77_s22 = sshll.u32 %s4085_s28, 4  ;;  %s57_s5 = int_to_ptr.vmem [resolvable:$true] %s56_s5  ;;  %s4222_s22 = int_to_ptr.vmem [resolvable:$true] %s77_s22 }
  0x48   :  { %s4002_s29 = scalar_lea.hbm %s4747_s4, 16 }
  0x49   :  { %p4003_p4 = scmp.ne.s32.totalorder %s4747_s4, %s4002_s29  ;;  %p4006_p5 = scmp.lt.u32.totalorder %s4002_s29, %s4747_s4 }
  0x4b   :  { %p4008_p6 = pnand %p4006_p5, %p4003_p4 }
  0x4d   :  { %4011 = shalt.err (!%p4008_p6)
}
  0x4e   :  { %s4012_s2 = scalar_lea.vmem %s57_s5, 16  ;;  %s4016_s15 = scalar_lea.vmem %s57_s5, 32 }
  0x4f   :  { %p4013_p7 = scmp.ne.s32.totalorder %s57_s5, %s4012_s2  ;;  %p4017_p8 = scmp.lt.s32.totalorder %s57_s5, %s57_s5 }
  0x50   :  { %p4018_p9 = scmp.lt.s32.totalorder %s4016_s15, %s4012_s2 }
  0x52   :  { %p4019_p10 = por %p4018_p9, %p4017_p8 }
  0x54   :  { %p4020_p11 = pnand %p4019_p10, %p4013_p7 }
  0x56   :  { %4023 = shalt.err (!%p4020_p11)
}
  0x57   :  { %59 = dma.hbm_to_vmem [thread:$0]  %s4747_s4, 16, %s57_s5, [#allocation7]  }
  0x58   :  { %s4024_s24 = scalar_lea.hbm %s4749_s6, 8192 }
  0x59   :  { %p4025_p12 = scmp.ne.s32.totalorder %s4749_s6, %s4024_s24  ;;  %p4028_p13 = scmp.lt.u32.totalorder %s4024_s24, %s4749_s6 }
  0x5b   :  { %p4030_p0 = pnand %p4028_p13, %p4025_p12 }
  0x5d   :  { %4033 = shalt.err (!%p4030_p0)
}
  0x5e   :  { %s4034_s29 = scalar_lea.vmem %s4222_s22, 8192  ;;  %p4039_p2 = scmp.lt.s32.totalorder %s4222_s22, %s4222_s22 }
  0x5f   :  { %p4035_p1 = scmp.ne.s32.totalorder %s4222_s22, %s4034_s29  ;;  %p4040_p3 = scmp.lt.s32.totalorder %s4034_s29, %s4034_s29 }
  0x61   :  { %p4041_p4 = por %p4040_p3, %p4039_p2 }
  0x63   :  { %p4042_p5 = pnand %p4041_p4, %p4035_p1 }
  0x65   :  { %4045 = shalt.err (!%p4042_p5)
}
  0x66   :  { %83 = dma.hbm_to_vmem [thread:$0]  %s4749_s6, 8192, %s4222_s22, [#allocation10], %s4080_s3, %s4080_s3, %s4081_s30  }
  0x67   :  { %s4086_s23 = smov [#allocation14]   ;;  %s4046_s2 = scalar_lea.hbm %s4752_s9, 16 }
  0x68   :  { %s104_s16 = sshll.u32 %s4086_s23, 4  ;;  %p4047_p6 = scmp.ne.s32.totalorder %s4752_s9, %s4046_s2  ;;  %s105_s16 = int_to_ptr.vmem [resolvable:$true] %s104_s16 }
  0x69   :  { %p4050_p7 = scmp.lt.u32.totalorder %s4046_s2, %s4752_s9 }
  0x6b   :  { %p4052_p8 = pnand %p4050_p7, %p4047_p6 }
  0x6d   :  { %4055 = shalt.err (!%p4052_p8)
}
  0x6e   :  { %s4056_s8 = scalar_lea.vmem %s105_s16, 16  ;;  %s4060_s6 = scalar_lea.vmem %s105_s16, 32 }
  0x6f   :  { %p4057_p9 = scmp.ne.s32.totalorder %s105_s16, %s4056_s8  ;;  %p4061_p10 = scmp.lt.s32.totalorder %s105_s16, %s105_s16 }
  0x70   :  { %p4062_p11 = scmp.lt.s32.totalorder %s4060_s6, %s4056_s8 }
  0x72   :  { %p4063_p12 = por %p4062_p11, %p4061_p10 }
  0x74   :  { %p4064_p13 = pnand %p4063_p12, %p4057_p9 }
  0x76   :  { %4067 = shalt.err (!%p4064_p13)
}
  0x77   :  { %107 = dma.hbm_to_vmem [thread:$0]  %s4752_s9, 16, %s105_s16, [#allocation13]  }
  0x78   :  { %4068 = dma.done.wait [#allocation5], 16  }
  0x79   :  { %4069 = vsyncadd [#allocation5], 4294967280 }
  0x7a   :  { %4070 = dma.done.wait [#allocation7], 2064  }
  0x7b   :  { %4071 = vsyncadd [#allocation7], 4294965232 }
  0x7c   :  { %4072 = dma.done.wait [#allocation10], 16384  }
  0x7d   :  { %4073 = vsyncadd [#allocation10], 4294950912 }
  0x7e   :  { %4074 = dma.done.wait [#allocation13], 2064  }
  0x7f   :  { %4075 = vsyncadd [#allocation13], 4294965232  ;;  %v139_v0 = vlaneseq  ;;  %v4087_v1 = vmov 1983009808   ;;  %v4088_v4 = vmov 1934713408  }
  0x80   :  { %v137_v2 = vunpack.c.l.s4 %v4087_v1  ;;  %v168_v5 = vunpack.c.l.s4 %v4088_v4  ;;  %v201_v9 = vld [vmem:[%s4744_s1] sm:$0xff]  ;;  %v202_v10 = vld [vmem:[%s4744_s1 + $0x8] sm:$0xff]  ;;  %v4089_v14 = vmov 0.0   ;;  %v344_v17 = vld [vmem:[#allocation6] sm:$0xff]  ;;  %vm252_vm0 = vcmask 130048  }
  0x81   :  { %v4268_v3 = vshrl.u32 %v139_v0, 7  ;;  %v133_v11 = vld [vmem:[%s4743_s0] sm:$0xff]  ;;  %v3120_v12 = vpack.c.bf16 %v202_v10, %v201_v9  ;;  %v134_v13 = vld [vmem:[%s4743_s0 + $0x8] sm:$0xff]  ;;  %v348_v25 = vld [vmem:[#allocation6 + $0x20] sm:$0xff] }
  0x82   :  { %v138_v6 = vunpack.c.0.s8 %v137_v2  ;;  %v169_v8 = vunpack.c.0.s8 %v168_v5  ;;  %v135_v15 = vcombine.high %v133_v11, %v4089_v14  ;;  %v345_v18 = vld [vmem:[#allocation6 + $0x8] sm:$0xff]  ;;  %v150_v19 = vcombine.high %v134_v13, %v4089_v14  ;;  %v346_v23 = vld [vmem:[#allocation6 + $0x10] sm:$0xff]  ;;  %v347_v24 = vld [vmem:[#allocation6 + $0x18] sm:$0xff] }
  0x83   :  { %v3124_v22 = vpack.c.bf16 %v345_v18, %v344_v17  ;;  %3121 = vmatprep.subr.bf16.mxu0 %v3120_v12  ;;  %v3128_v27 = vpack.c.bf16 %v347_v24, %v346_v23  ;;  %v349_v28 = vld [vmem:[#allocation6 + $0x28] sm:$0xff]  ;;  %v350_v53 = vld [vmem:[#allocation6 + $0x30] sm:$0xff]  ;;  %v351_v54 = vld [vmem:[#allocation6 + $0x38] sm:$0xff] }
  0x84   :  { %v4271_v7 = vsub.s32 %v138_v6, %v4268_v3  ;;  %v4290_v21 = vsub.s32 %v169_v8, %v4268_v3  ;;  %3123 = vmatpush3.bf16.msra.mxu0 %v3120_v12  ;;  %v3132_v32 = vpack.c.bf16 %v349_v28, %v348_v25  ;;  %v3136_v55 = vpack.c.bf16 %v351_v54, %v350_v53  ;;  %v352_v56 = vld [vmem:[#allocation6 + $0x40] sm:$0xff]  ;;  %v353_v57 = vld [vmem:[#allocation6 + $0x48] sm:$0xff]  ;;  %v354_v59 = vld [vmem:[#allocation6 + $0x50] sm:$0xff] }
  0x85   :  { %3125 = vmatprep.subr.bf16.mxu1 %v3124_v22  ;;  %v3140_v58 = vpack.c.bf16 %v353_v57, %v352_v56  ;;  %v355_v60 = vld [vmem:[#allocation6 + $0x58] sm:$0xff]  ;;  %v356_v61 = vld [vmem:[#allocation6 + $0x60] sm:$0xff]  ;;  %v357_v63 = vld [vmem:[#allocation6 + $0x68] sm:$0xff] }
  0x86   :  { %v142_v16 = vrot.slane %v133_v11, %v4271_v7  ;;  %v157_v20 = vrot.slane %v134_v13, %v4271_v7  ;;  %v149_v26 = vrot.slane %v135_v15, %v4271_v7  ;;  %v164_v29 = vrot.slane %v150_v19, %v4271_v7  ;;  %3127 = vmatpush3.bf16.msra.mxu1 %v3124_v22  ;;  %v358_v1 = vld [vmem:[#allocation6 + $0x70] sm:$0xff]  ;;  %v359_v2 = vld [vmem:[#allocation6 + $0x78] sm:$0xff]  ;;  %v454_v11 = vld [vmem:[#allocation9] sm:$0xff] }
  0x87   :  { %3129 = vmatprep.subr.bf16.mxu1 %v3128_v27  ;;  %v3144_v62 = vpack.c.bf16 %v355_v60, %v354_v59  ;;  %v3148_v0 = vpack.c.bf16 %v357_v63, %v356_v61  ;;  %v3152_v4 = vpack.c.bf16 %v359_v2, %v358_v1  ;;  %v455_v5 = vld [vmem:[#allocation9 + $0x8] sm:$0xff]  ;;  %v457_v8 = vld [vmem:[#allocation9 + $0x18] sm:$0xff]  ;;  %v458_v12 = vld [vmem:[#allocation9 + $0x20] sm:$0xff] }
  0x88   :  { %v165_v30 = vcombine.low %v142_v16, %v157_v20  ;;  %v166_v31 = vcombine.high %v142_v16, %v157_v20  ;;  %v181_v35 = vcombine.low %v149_v26, %v164_v29  ;;  %v182_v36 = vcombine.high %v149_v26, %v164_v29  ;;  %v459_v6 = vld [vmem:[#allocation9 + $0x28] sm:$0xff]  ;;  %v461_v10 = vld [vmem:[#allocation9 + $0x38] sm:$0xff]  ;;  %v462_v19 = vld [vmem:[#allocation9 + $0x40] sm:$0xff] }
  0x89   :  { %v3156_v9 = vpack.c.bf16 %v459_v6, %v455_v5  ;;  %v3188_v13 = vpack.c.bf16 %v461_v10, %v457_v8  ;;  %v3158_v15 = vpack.c.bf16 %v458_v12, %v454_v11  ;;  %v463_v16 = vld [vmem:[#allocation9 + $0x48] sm:$0xff]  ;;  %v466_v20 = vld [vmem:[#allocation9 + $0x60] sm:$0xff]  ;;  %v2968_v29 = vld [vmem:[#allocation4] ss:$0 sm:$0xff] }
  0x8a   :  { %v173_v33 = vrot.slane %v165_v30, %v4290_v21  ;;  %v180_v34 = vrot.slane %v166_v31, %v4290_v21  ;;  %v189_v39 = vrot.slane %v181_v35, %v4290_v21  ;;  %v196_v40 = vrot.slane %v182_v36, %v4290_v21  ;;  %3131 = vmatpush3.bf16.msra.mxu1 %v3128_v27  ;;  %v467_v17 = vld [vmem:[#allocation9 + $0x68] sm:$0xff]  ;;  %v470_v26 = vld [vmem:[#allocation9 + $0x80] sm:$0xff]  ;;  %v477_v53 = vld [vmem:[#allocation9 + $0xb8] sm:$0xff] }
  0x8b   :  { %3133 = vmatprep.subr.bf16.mxu1 %v3132_v32  ;;  %3157 = vmatprep.subr.bf16.mxu0 %v3156_v9  ;;  %v3160_v18 = vpack.c.bf16 %v467_v17, %v463_v16  ;;  %v3162_v22 = vpack.c.bf16 %v466_v20, %v462_v19  ;;  %v471_v23 = vld [vmem:[#allocation9 + $0x88] sm:$0xff]  ;;  %v474_v27 = vld [vmem:[#allocation9 + $0xa0] sm:$0xff]  ;;  %v472_v56 = vld [vmem:[#allocation9 + $0x90] sm:$0xff] }
  0x8c   :  { %v197_v37 = vcombine.high %v173_v33, %v4089_v14  ;;  %v198_v38 = vcombine.high %v180_v34, %v4089_v14  ;;  %v199_v43 = vcombine.high %v189_v39, %v4089_v14  ;;  %v200_v44 = vcombine.high %v196_v40, %v4089_v14  ;;  %v475_v24 = vld [vmem:[#allocation9 + $0xa8] sm:$0xff]  ;;  %v476_v57 = vld [vmem:[#allocation9 + $0xb0] sm:$0xff]  ;;  %v481_v61 = vld [vmem:[#allocation9 + $0xd8] sm:$0xff] }
  0x8d   :  { %v3164_v25 = vpack.c.bf16 %v475_v24, %v471_v23  ;;  %v3166_v28 = vpack.c.bf16 %v474_v27, %v470_v26  ;;  %v479_v59 = vld [vmem:[#allocation9 + $0xc8] sm:$0xff]  ;;  %v485_v63 = vld [vmem:[#allocation9 + $0xf8] sm:$0xff]  ;;  %v482_v1 = vld [vmem:[#allocation9 + $0xe0] sm:$0xff] }
  0x8e   :  { %v218_v41 = vcombine.low %v173_v33, %v197_v37  ;;  %v219_v42 = vcombine.low %v180_v34, %v198_v38  ;;  %v235_v47 = vcombine.low %v189_v39, %v199_v43  ;;  %v236_v48 = vcombine.low %v196_v40, %v200_v44  ;;  %3135 = vmatpush3.bf16.msra.mxu1 %v3132_v32  ;;  %v456_v39 = vld [vmem:[#allocation9 + $0x10] sm:$0xff]  ;;  %v465_v43 = vld [vmem:[#allocation9 + $0x58] sm:$0xff]  ;;  %v483_v60 = vld [vmem:[#allocation9 + $0xe8] sm:$0xff] }
  0x8f   :  { %3137 = vmatprep.subr.bf16.mxu1 %v3136_v55  ;;  %v460_v40 = vld [vmem:[#allocation9 + $0x30] sm:$0xff]  ;;  %v469_v44 = vld [vmem:[#allocation9 + $0x78] sm:$0xff]  ;;  %v3200_v2 = vpack.c.bf16 %v485_v63, %v481_v61  ;;  %v487_v9 = vld [vmem:[#allocation9 + $0x108] sm:$0xff] }
  0x90   :  { %v226_v45 = vrot.slane %v218_v41, %v4271_v7  ;;  %v233_v46 = vrot.slane %v219_v42, %v4271_v7  ;;  %v243_v50 = vrot.slane %v235_v47, %v4271_v7  ;;  %v250_v51 = vrot.slane %v236_v48, %v4271_v7  ;;  %v480_v5 = vld [vmem:[#allocation9 + $0xd0] sm:$0xff]  ;;  %v491_v10 = vld [vmem:[#allocation9 + $0x128] sm:$0xff]  ;;  %v489_v11 = vld [vmem:[#allocation9 + $0x118] sm:$0xff] }
  0x91   :  { %v3192_v48 = vpack.c.bf16 %v469_v44, %v465_v43  ;;  %v484_v6 = vld [vmem:[#allocation9 + $0xf0] sm:$0xff]  ;;  %v3172_v12 = vpack.c.bf16 %v491_v10, %v487_v9  ;;  %v490_v16 = vld [vmem:[#allocation9 + $0x120] sm:$0xff]  ;;  %v495_v23 = vld [vmem:[#allocation9 + $0x148] sm:$0xff] }
  0x92   :  { %v234_v49 = vcombine.low %v226_v45, %v233_v46  ;;  %v251_v52 = vcombine.low %v243_v50, %v250_v51  ;;  %3139 = vmatpush3.bf16.msra.mxu1 %v3136_v55  ;;  %v3190_v46 = vpack.c.bf16 %v460_v40, %v456_v39  ;;  %v468_v50 = vld [vmem:[#allocation9 + $0x70] sm:$0xff]  ;;  %v3202_v8 = vpack.c.bf16 %v484_v6, %v480_v5  ;;  %v499_v24 = vld [vmem:[#allocation9 + $0x168] sm:$0xff]  ;;  %v501_v27 = vld [vmem:[#allocation9 + $0x178] sm:$0xff] }
  0x93   :  { %3141 = vmatprep.subr.bf16.mxu1 %v3140_v58  ;;  %v488_v19 = vld [vmem:[#allocation9 + $0x110] sm:$0xff]  ;;  %v3176_v26 = vpack.c.bf16 %v499_v24, %v495_v23  ;;  %v715_v63 = vld [vmem:[#allocation11 + $0x38] sm:$0xff] }
  0x94   :  { %3047 = vmatprep.mubr.msk.f32.mxu0 %vm252_vm0, %v234_v49  ;;  %v464_v49 = vld [vmem:[#allocation9 + $0x50] sm:$0xff]  ;;  %v723_v23 = vld [vmem:[#allocation11 + $0x78] sm:$0xff] }
  0x95   :  { %3048 = vmatmul.mubr.msk.f32.vlgmr.msra.gmra.mrb[0].mxu0 %vm252_vm0, %v251_v52  ;;  %v473_v52 = vld [vmem:[#allocation9 + $0x98] sm:$0xff]  ;;  %v3194_v54 = vpack.c.bf16 %v468_v50, %v464_v49  ;;  %v492_v20 = vld [vmem:[#allocation9 + $0x130] sm:$0xff] }
  0x96   :  { %604 = vmatprep.mubr.f32.mxu0 %v4089_v14  ;;  %3143 = vmatpush3.bf16.msra.mxu1 %v3140_v58  ;;  %v3196_v55 = vpack.c.bf16 %v477_v53, %v473_v52  ;;  %v3198_v58 = vpack.c.bf16 %v476_v57, %v472_v56  ;;  %v504_v43 = vld [vmem:[#allocation9 + $0x190] sm:$0xff]  ;;  %v513_v50 = vld [vmem:[#allocation9 + $0x1d8] sm:$0xff]  ;;  %v510_v52 = vld [vmem:[#allocation9 + $0x1c0] sm:$0xff] }
  0x97   :  { %3145 = vmatprep.subr.bf16.mxu1 %v3144_v62  ;;  %3159 = vmatpush1.bf16.msra.mxu0 %v3158_v15  ;;  %v486_v15 = vld [vmem:[#allocation9 + $0x100] sm:$0xff]  ;;  %v516_v56 = vld [vmem:[#allocation9 + $0x1f0] sm:$0xff] }
  0x98   :  { %3161 = vmatprep.subr.bf16.mxu0 %v3160_v18  ;;  %v3174_v18 = vpack.c.bf16 %v490_v16, %v486_v15  ;;  %v710_v15 = vld [vmem:[#allocation11 + $0x10] sm:$0xff] }
  0x99   :  { %v714_v16 = vld [vmem:[#allocation11 + $0x30] sm:$0xff] }
  0x9a   :  { %3147 = vmatpush3.bf16.msra.mxu1 %v3144_v62  ;;  %v3168_v62 = vpack.c.bf16 %v483_v60, %v479_v59  ;;  %v713_v59 = vld [vmem:[#allocation11 + $0x28] sm:$0xff]  ;;  %v711_v60 = vld [vmem:[#allocation11 + $0x18] sm:$0xff] }
  0x9b   :  { %3149 = vmatprep.subr.bf16.mxu1 %v3148_v0  ;;  %3163 = vmatpush1.bf16.msra.mxu0 %v3162_v22  ;;  %v3206_v22 = vpack.c.bf16 %v492_v20, %v488_v19  ;;  %v721_v20 = vld [vmem:[#allocation11 + $0x68] sm:$0xff] }
  0x9c   :  { %3165 = vmatprep.subr.bf16.mxu0 %v3164_v25  ;;  %v497_v25 = vld [vmem:[#allocation9 + $0x158] sm:$0xff] }
  0x9e   :  { %3151 = vmatpush3.bf16.msra.mxu1 %v3148_v0  ;;  %v478_v0 = vld [vmem:[#allocation9 + $0xc0] sm:$0xff] }
  0x9f   :  { %3153 = vmatprep.subr.bf16.mxu1 %v3152_v4  ;;  %3167 = vmatpush1.bf16.msra.mxu0 %v3166_v28  ;;  %v494_v28 = vld [vmem:[#allocation9 + $0x140] sm:$0xff] }
  0xa0   :  { %3169 = vmatprep.subr.bf16.mxu0 %v3168_v62 }
  0xa2   :  { %3155 = vmatpush3.bf16.msra.mxu1 %v3152_v4  ;;  %v3170_v4 = vpack.c.bf16 %v482_v1, %v478_v0  ;;  %v4310_v0 = vpack.c.bf16 %v715_v63, %v711_v60  ;;  %v2973_v1 = vld [vmem:[#allocation8] ss:$0 sm:$0xff]  ;;  %v741_v60 = vld [vmem:[#allocation11 + $0x108] sm:$0xff] }
  0xa3   :  { %3189 = vmatprep.subr.bf16.mxu1 %v3188_v13  ;;  %v493_v13 = vld [vmem:[#allocation9 + $0x138] sm:$0xff] }
  0xa4   :  { %3171 = vmatpush1.bf16.msra.mxu0 %v3170_v4  ;;  %v3204_v17 = vpack.c.bf16 %v493_v13, %v489_v11  ;;  %v712_v13 = vld [vmem:[#allocation11 + $0x20] sm:$0xff]  ;;  %v743_v63 = vld [vmem:[#allocation11 + $0x118] sm:$0xff] }
  0xa5   :  { %3173 = vmatprep.subr.bf16.mxu0 %v3172_v12  ;;  %v708_v12 = vld [vmem:[#allocation11] sm:$0xff] }
  0xa8   :  { %3175 = vmatpush1.bf16.msra.mxu0 %v3174_v18  ;;  %v717_v18 = vld [vmem:[#allocation11 + $0x48] sm:$0xff] }
  0xa9   :  { %3177 = vmatprep.subr.bf16.mxu0 %v3176_v26  ;;  %v4316_v26 = vpack.c.bf16 %v714_v16, %v710_v15  ;;  %v751_v15 = vld [vmem:[#allocation11 + $0x158] sm:$0xff] }
  0xaa   :  { %v755_v16 = vld [vmem:[#allocation11 + $0x178] sm:$0xff] }
 0x168   :  { %v3049_v30 = vpop.f32.mrb[0].mxu0 }
 0x169   :  { %v329_v31 = vadd.f32 %v3049_v30, %v2968_v29  ;;  %v323_v32 = vpop.f32.mrb[1].mxu0  ;;  %v3208_v30 = vpack.c.bf16 %v501_v27, %v497_v25  ;;  %v4314_v25 = vpack.c.bf16 %v712_v13, %v708_v12  ;;  %v716_v27 = vld [vmem:[#allocation11 + $0x40] sm:$0xff]  ;;  %v749_v12 = vld [vmem:[#allocation11 + $0x148] sm:$0xff] }
 0x16a   :  { %v324_v33 = vadd.f32 %v2968_v29, %v323_v32  ;;  %v498_v29 = vld [vmem:[#allocation9 + $0x160] sm:$0xff]  ;;  %v496_v32 = vld [vmem:[#allocation9 + $0x150] sm:$0xff]  ;;  %v753_v13 = vld [vmem:[#allocation11 + $0x168] sm:$0xff] }
 0x16b   :  { %v335_v34 = vmin.f32 %v329_v31, 0.0  ;;  %vm333_vm2 = vcmp.gt.f32.partialorder %v329_v31, 0.0 }
 0x16c   :  { %v334_v35 = vmin.f32 %v324_v33, 0.0  ;;  %vm332_vm1 = vcmp.gt.f32.partialorder %v324_v33, 0.0 }
 0x16d   :  { %v338_v36 = vmul.f32 1.442695, %v335_v34  ;;  %v503_v34 = vld [vmem:[#allocation9 + $0x188] sm:$0xff] }
 0x16e   :  { %v336_v37 = vmul.f32 1.442695, %v334_v35 }
 0x16f   :  { %3778 = vpow2.f32 %v338_v36  ;;  %v507_v36 = vld [vmem:[#allocation9 + $0x1a8] sm:$0xff] }
 0x170   :  { %3780 = vpow2.f32 %v336_v37  ;;  %v505_v37 = vld [vmem:[#allocation9 + $0x198] sm:$0xff]  ;;  %v3180_v39 = vpack.c.bf16 %v507_v36, %v503_v34  ;;  %v729_v36 = vld [vmem:[#allocation11 + $0xa8] sm:$0xff] }
 0x179   :  { %v3779_v38 = vpop.eup %3778 }
 0x17a   :  { %v3781_v41 = vpop.eup %3780  ;;  %v2972_v42 = vadd.f32 -1.0, %v3779_v38  ;;  %v509_v38 = vld [vmem:[#allocation9 + $0x1b8] sm:$0xff] }
 0x17b   :  { %v2971_v45 = vadd.f32 -1.0, %v3781_v41  ;;  %v3212_v40 = vpack.c.bf16 %v509_v38, %v505_v37  ;;  %v502_v41 = vld [vmem:[#allocation9 + $0x180] sm:$0xff]  ;;  %v727_v37 = vld [vmem:[#allocation11 + $0x98] sm:$0xff] }
 0x17c   :  { %v343_v51 = vsel %vm333_vm2, %v329_v31, %v2972_v42  ;;  %v3178_v31 = vpack.c.bf16 %v498_v29, %v494_v28  ;;  %v506_v42 = vld [vmem:[#allocation9 + $0x1a0] sm:$0xff]  ;;  %v718_v29 = vld [vmem:[#allocation11 + $0x50] sm:$0xff]  ;;  %v731_v38 = vld [vmem:[#allocation11 + $0xb8] sm:$0xff] }
 0x17d   :  { %v342_v47 = vsel %vm332_vm1, %v324_v33, %v2971_v45  ;;  %v500_v33 = vld [vmem:[#allocation9 + $0x170] sm:$0xff]  ;;  %v3182_v44 = vpack.c.bf16 %v506_v42, %v502_v41  ;;  %v720_v28 = vld [vmem:[#allocation11 + $0x60] sm:$0xff] }
 0x17e   :  { %3082 = vmatprep.mubr.f32.mxu1 %v342_v47  ;;  %v3210_v35 = vpack.c.bf16 %v500_v33, %v496_v32  ;;  %3179 = vmatpush1.bf16.msra.mxu0 %v3178_v31  ;;  %v508_v45 = vld [vmem:[#allocation9 + $0x1b0] sm:$0xff]  ;;  %v515_v47 = vld [vmem:[#allocation9 + $0x1e8] sm:$0xff]  ;;  %v4318_v33 = vpack.c.bf16 %v721_v20, %v717_v18  ;;  %v724_v41 = vld [vmem:[#allocation11 + $0x80] sm:$0xff] }
 0x17f   :  { %3083 = vmatmul.mubr.f32.vlgmr.msra.gmra.mrb[0].mxu1 %v343_v51  ;;  %3181 = vmatprep.subr.bf16.mxu0 %v3180_v39  ;;  %v517_v51 = vld [vmem:[#allocation9 + $0x1f8] sm:$0xff]  ;;  %v725_v31 = vld [vmem:[#allocation11 + $0x88] sm:$0xff]  ;;  %v4324_v39 = vpack.c.bf16 %v720_v28, %v716_v27  ;;  %v728_v42 = vld [vmem:[#allocation11 + $0xa0] sm:$0xff] }
 0x180   :  { %3191 = vmatpush1.bf16.msra.mxu1 %v3190_v46  ;;  %681 = vmatprep.mubr.f32.mxu1 %v4089_v14  ;;  %v511_v46 = vld [vmem:[#allocation9 + $0x1c8] sm:$0xff]  ;;  %v3216_v53 = vpack.c.bf16 %v517_v51, %v513_v50  ;;  %v735_v50 = vld [vmem:[#allocation11 + $0xd8] sm:$0xff]  ;;  %v752_v20 = vld [vmem:[#allocation11 + $0x160] sm:$0xff] }
 0x181   :  { %3193 = vmatprep.subr.bf16.mxu1 %v3192_v48  ;;  %v3214_v48 = vpack.c.bf16 %v508_v45, %v504_v43  ;;  %v3184_v49 = vpack.c.bf16 %v515_v47, %v511_v46  ;;  %v4330_v43 = vpack.c.bf16 %v729_v36, %v725_v31  ;;  %v726_v45 = vld [vmem:[#allocation11 + $0x90] sm:$0xff]  ;;  %v733_v47 = vld [vmem:[#allocation11 + $0xc8] sm:$0xff]  ;;  %v739_v51 = vld [vmem:[#allocation11 + $0xf8] sm:$0xff] }
 0x182   :  { %3183 = vmatpush1.bf16.msra.mxu0 %v3182_v44  ;;  %v4332_v44 = vpack.c.bf16 %v731_v38, %v727_v37  ;;  %v730_v46 = vld [vmem:[#allocation11 + $0xb0] sm:$0xff]  ;;  %v757_v28 = vld [vmem:[#allocation11 + $0x188] sm:$0xff]  ;;  %v763_v31 = vld [vmem:[#allocation11 + $0x1b8] sm:$0xff] }
 0x183   :  { %3185 = vmatprep.subr.bf16.mxu0 %v3184_v49  ;;  %v737_v49 = vld [vmem:[#allocation11 + $0xe8] sm:$0xff]  ;;  %v754_v27 = vld [vmem:[#allocation11 + $0x170] sm:$0xff]  ;;  %v756_v36 = vld [vmem:[#allocation11 + $0x180] sm:$0xff] }
 0x184   :  { %3195 = vmatpush1.bf16.msra.mxu1 %v3194_v54  ;;  %v514_v54 = vld [vmem:[#allocation9 + $0x1e0] sm:$0xff] }
 0x185   :  { %3197 = vmatprep.subr.bf16.mxu1 %v3196_v55  ;;  %v512_v55 = vld [vmem:[#allocation9 + $0x1d0] sm:$0xff]  ;;  %v3186_v57 = vpack.c.bf16 %v514_v54, %v510_v52  ;;  %v4338_v52 = vpack.c.bf16 %v728_v42, %v724_v41  ;;  %v732_v54 = vld [vmem:[#allocation11 + $0xc0] sm:$0xff] }
 0x186   :  { %v3218_v61 = vpack.c.bf16 %v516_v56, %v512_v55  ;;  %v736_v55 = vld [vmem:[#allocation11 + $0xe0] sm:$0xff]  ;;  %v4344_v56 = vpack.c.bf16 %v737_v49, %v733_v47  ;;  %v758_v42 = vld [vmem:[#allocation11 + $0x190] sm:$0xff]  ;;  %v769_v47 = vld [vmem:[#allocation11 + $0x1e8] sm:$0xff] }
 0x187   :  { %3187 = vmatpush1.bf16.msra.mxu0 %v3186_v57  ;;  %v4346_v57 = vpack.c.bf16 %v739_v51, %v735_v50  ;;  %v760_v37 = vld [vmem:[#allocation11 + $0x1a0] sm:$0xff]  ;;  %v771_v49 = vld [vmem:[#allocation11 + $0x1f8] sm:$0xff] }
 0x188   :  { %3199 = vmatpush1.bf16.msra.mxu1 %v3198_v58  ;;  %v709_v58 = vld [vmem:[#allocation11 + $0x8] sm:$0xff]  ;;  %v4388_v50 = vpack.c.bf16 %v760_v37, %v756_v36 }
 0x189   :  { %3201 = vmatprep.subr.bf16.mxu1 %v3200_v2  ;;  %v4308_v62 = vpack.c.bf16 %v713_v59, %v709_v58  ;;  %v734_v58 = vld [vmem:[#allocation11 + $0xd0] sm:$0xff] }
 0x18a   :  { %v738_v59 = vld [vmem:[#allocation11 + $0xf0] sm:$0xff] }
 0x18b   :  { %3221 = vmatprep.subr.bf16.mxu0 %v4308_v62 }
 0x18c   :  { %3203 = vmatpush1.bf16.msra.mxu1 %v3202_v8 }
 0x18d   :  { %3205 = vmatprep.subr.bf16.mxu1 %v3204_v17 }
 0x190   :  { %3207 = vmatpush1.bf16.msra.mxu1 %v3206_v22  ;;  %v719_v22 = vld [vmem:[#allocation11 + $0x58] sm:$0xff] }
 0x191   :  { %3209 = vmatprep.subr.bf16.mxu1 %v3208_v30  ;;  %v722_v30 = vld [vmem:[#allocation11 + $0x70] sm:$0xff]  ;;  %v4320_v34 = vpack.c.bf16 %v723_v23, %v719_v22  ;;  %v4370_v22 = vpack.c.bf16 %v753_v13, %v749_v12  ;;  %v4372_v23 = vpack.c.bf16 %v755_v16, %v751_v15  ;;  %v526_v12 = vsub.s32 1, %v4268_v3 }
 0x192   :  { %v534_v13 = vsub.s32 3, %v4268_v3 }
 0x194   :  { %3211 = vmatpush1.bf16.msra.mxu1 %v3210_v35 }
 0x195   :  { %3213 = vmatprep.subr.bf16.mxu1 %v3212_v40  ;;  %v4326_v40 = vpack.c.bf16 %v722_v30, %v718_v29  ;;  %v761_v29 = vld [vmem:[#allocation11 + $0x1a8] sm:$0xff]  ;;  %v759_v30 = vld [vmem:[#allocation11 + $0x198] sm:$0xff] }
 0x196   :  { %v4382_v38 = vpack.c.bf16 %v761_v29, %v757_v28  ;;  %v4384_v41 = vpack.c.bf16 %v763_v31, %v759_v30 }
 0x198   :  { %3215 = vmatpush1.bf16.msra.mxu1 %v3214_v48 }
 0x199   :  { %3217 = vmatprep.subr.bf16.mxu1 %v3216_v53  ;;  %v4340_v53 = vpack.c.bf16 %v730_v46, %v726_v45  ;;  %v762_v45 = vld [vmem:[#allocation11 + $0x1b0] sm:$0xff]  ;;  %v765_v46 = vld [vmem:[#allocation11 + $0x1c8] sm:$0xff] }
 0x19a   :  { %v4390_v51 = vpack.c.bf16 %v762_v45, %v758_v42 }
 0x19c   :  { %3219 = vmatpush1.bf16.msra.mxu1 %v3218_v61  ;;  %v745_v61 = vld [vmem:[#allocation11 + $0x128] sm:$0xff] }
 0x19d   :  { %3253 = vmatprep.subr.bf16.mxu1 %v4310_v0 }
 0x252   :  { %v3084_v2 = vpop.f32.mrb[0].mxu1 }
 0x253   :  { %v439_v4 = vadd.f32 %v3084_v2, %v2973_v1  ;;  %v433_v5 = vpop.f32.mrb[1].mxu1  ;;  %v4352_v2 = vpack.c.bf16 %v736_v55, %v732_v54  ;;  %v764_v54 = vld [vmem:[#allocation11 + $0x1c0] sm:$0xff]  ;;  %v4394_v55 = vpack.c.bf16 %v769_v47, %v765_v46 }
 0x254   :  { %v434_v6 = vadd.f32 %v2973_v1, %v433_v5  ;;  %v747_v1 = vld [vmem:[#allocation11 + $0x138] sm:$0xff]  ;;  %v740_v5 = vld [vmem:[#allocation11 + $0x100] sm:$0xff] }
 0x255   :  { %v445_v8 = vmin.f32 %v439_v4, 0.0  ;;  %vm443_vm4 = vcmp.gt.f32.partialorder %v439_v4, 0.0 }
 0x256   :  { %v444_v9 = vmin.f32 %v434_v6, 0.0  ;;  %vm442_vm3 = vcmp.gt.f32.partialorder %v434_v6, 0.0 }
 0x257   :  { %v448_v10 = vmul.f32 1.442695, %v445_v8  ;;  %v4358_v8 = vpack.c.bf16 %v745_v61, %v741_v60  ;;  %v766_v60 = vld [vmem:[#allocation11 + $0x1d0] sm:$0xff] }
 0x258   :  { %v446_v11 = vmul.f32 1.442695, %v444_v9  ;;  %v4360_v9 = vpack.c.bf16 %v747_v1, %v743_v63  ;;  %v770_v61 = vld [vmem:[#allocation11 + $0x1f0] sm:$0xff] }
 0x259   :  { %3782 = vpow2.f32 %v448_v10  ;;  %v742_v10 = vld [vmem:[#allocation11 + $0x110] sm:$0xff]  ;;  %v4402_v1 = vpack.c.bf16 %v770_v61, %v766_v60 }
 0x25a   :  { %3784 = vpow2.f32 %v446_v11  ;;  %v746_v11 = vld [vmem:[#allocation11 + $0x130] sm:$0xff] }
 0x25b   :  { %v4366_v18 = vpack.c.bf16 %v746_v11, %v742_v10  ;;  %v530_v10 = vsub.s32 2, %v4268_v3  ;;  %v518_v11 = vld [vmem:[%s4750_s7] sm:$0xf] }
 0x25d   :  { %v531_v16 = vrot.slane %v518_v11, %v530_v10 }
 0x263   :  { %v3783_v17 = vpop.eup %3782 }
 0x264   :  { %v3785_v19 = vpop.eup %3784  ;;  %v2975_v35 = vadd.f32 -1.0, %v3783_v17 }
 0x265   :  { %v2974_v24 = vadd.f32 -1.0, %v3785_v19  ;;  %v748_v19 = vld [vmem:[#allocation11 + $0x140] sm:$0xff] }
 0x266   :  { %v453_v48 = vsel %vm443_vm4, %v439_v4, %v2975_v35  ;;  %v4354_v4 = vpack.c.bf16 %v738_v59, %v734_v58  ;;  %v768_v59 = vld [vmem:[#allocation11 + $0x1e0] sm:$0xff] }
 0x267   :  { %v452_v32 = vsel %vm442_vm3, %v434_v6, %v2974_v24  ;;  %v744_v6 = vld [vmem:[#allocation11 + $0x120] sm:$0xff]  ;;  %v750_v24 = vld [vmem:[#allocation11 + $0x150] sm:$0xff]  ;;  %v4400_v63 = vpack.c.bf16 %v768_v59, %v764_v54 }
 0x268   :  { %605 = vmatmul.mubr.f32.vlgmr.msra.gmra.mrb[2].mxu0 %v452_v32  ;;  %682 = vmatmul.mubr.f32.vlgmr.msra.gmra.mrb[2].mxu1 %v452_v32  ;;  %v4364_v17 = vpack.c.bf16 %v744_v6, %v740_v5  ;;  %v4376_v32 = vpack.c.bf16 %v752_v20, %v748_v19  ;;  %v4378_v35 = vpack.c.bf16 %v754_v27, %v750_v24  ;;  %v702_v5 = vld [vmem:[%s4753_s10] sm:$0x3]  ;;  %v522_v6 = vsub.s32 0, %v4268_v3 }
 0x269   :  { %3223 = vmatpush1.bf16.msra.mxu0 %v4314_v25  ;;  %3255 = vmatpush1.bf16.msra.mxu1 %v4316_v26  ;;  %v527_v19 = vrot.slane %v518_v11, %v526_v12  ;;  %v535_v20 = vrot.slane %v518_v11, %v534_v13 }
 0x26a   :  { %610 = vmatprep.mubr.f32.mxu0 %v4089_v14  ;;  %687 = vmatprep.mubr.f32.mxu1 %v4089_v14  ;;  %v523_v15 = vrot.slane %v518_v11, %v522_v6 }
 0x26b   :  { %3225 = vmatprep.subr.bf16.mxu0 %v4318_v33  ;;  %3257 = vmatprep.subr.bf16.mxu1 %v4320_v34 }
 0x26c   :  { %611 = vmatmul.mubr.f32.gmra.mrb[4].mxu0 %v453_v48  ;;  %688 = vmatmul.mubr.f32.gmra.mrb[4].mxu1 %v453_v48  ;;  %v767_v48 = vld [vmem:[#allocation11 + $0x1d8] sm:$0xff] }
 0x26d   :  { %3227 = vmatpush1.bf16.msra.mxu0 %v4324_v39  ;;  %3259 = vmatpush1.bf16.msra.mxu1 %v4326_v40  ;;  %v4396_v58 = vpack.c.bf16 %v771_v49, %v767_v48 }
 0x26e   :  { %3229 = vmatprep.subr.bf16.mxu0 %v4330_v43  ;;  %3261 = vmatprep.subr.bf16.mxu1 %v4332_v44 }
 0x26f   :  { %836 = vmatprep.mubr.f32.mxu0 %v4089_v14  ;;  %907 = vmatprep.mubr.f32.mxu1 %v4089_v14 }
 0x271   :  { %3231 = vmatpush1.bf16.msra.mxu0 %v4338_v52  ;;  %3263 = vmatpush1.bf16.msra.mxu1 %v4340_v53 }
 0x272   :  { %3233 = vmatprep.subr.bf16.mxu0 %v4344_v56  ;;  %3265 = vmatprep.subr.bf16.mxu1 %v4346_v57 }
 0x275   :  { %3235 = vmatpush1.bf16.msra.mxu0 %v4352_v2  ;;  %3267 = vmatpush1.bf16.msra.mxu1 %v4354_v4 }
 0x276   :  { %3237 = vmatprep.subr.bf16.mxu0 %v4358_v8  ;;  %3269 = vmatprep.subr.bf16.mxu1 %v4360_v9 }
 0x279   :  { %3239 = vmatpush1.bf16.msra.mxu0 %v4364_v17  ;;  %3271 = vmatpush1.bf16.msra.mxu1 %v4366_v18 }
 0x27a   :  { %3241 = vmatprep.subr.bf16.mxu0 %v4370_v22  ;;  %3273 = vmatprep.subr.bf16.mxu1 %v4372_v23 }
 0x27d   :  { %3243 = vmatpush1.bf16.msra.mxu0 %v4376_v32  ;;  %3275 = vmatpush1.bf16.msra.mxu1 %v4378_v35 }
 0x27e   :  { %3245 = vmatprep.subr.bf16.mxu0 %v4382_v38  ;;  %3277 = vmatprep.subr.bf16.mxu1 %v4384_v41 }
 0x281   :  { %3247 = vmatpush1.bf16.msra.mxu0 %v4388_v50  ;;  %3279 = vmatpush1.bf16.msra.mxu1 %v4390_v51 }
 0x282   :  { %3249 = vmatprep.subr.bf16.mxu0 %v4394_v55  ;;  %3281 = vmatprep.subr.bf16.mxu1 %v4396_v58 }
 0x285   :  { %3251 = vmatpush1.bf16.msra.mxu0 %v4400_v63  ;;  %3283 = vmatpush1.bf16.msra.mxu1 %v4402_v1 }
 0x286   :  { %3285 = vmatprep.subr.bf16.mxu0 %v4308_v62  ;;  %3317 = vmatprep.subr.bf16.mxu1 %v4310_v0 }
 0x288   :  { %837 = vmatmul.mubr.f32.vlgmr.msra.gmra.mrb[6].mxu0 %v702_v5  ;;  %908 = vmatmul.mubr.f32.vlgmr.msra.gmra.mrb[6].mxu1 %v702_v5 }
 0x289   :  { %3287 = vmatpush1.bf16.msra.mxu0 %v4314_v25  ;;  %3319 = vmatpush1.bf16.msra.mxu1 %v4316_v26 }
 0x28a   :  { %3289 = vmatprep.subr.bf16.mxu0 %v4318_v33  ;;  %3321 = vmatprep.subr.bf16.mxu1 %v4320_v34 }
 0x28b   :  { %1075 = vmatprep.mubr.f32.mxu0 %v4089_v14  ;;  %1146 = vmatprep.mubr.f32.mxu1 %v4089_v14 }
 0x28d   :  { %3291 = vmatpush1.bf16.msra.mxu0 %v4324_v39  ;;  %3323 = vmatpush1.bf16.msra.mxu1 %v4326_v40 }
 0x28e   :  { %3293 = vmatprep.subr.bf16.mxu0 %v4330_v43  ;;  %3325 = vmatprep.subr.bf16.mxu1 %v4332_v44 }
 0x291   :  { %3295 = vmatpush1.bf16.msra.mxu0 %v4338_v52  ;;  %3327 = vmatpush1.bf16.msra.mxu1 %v4340_v53 }
 0x292   :  { %3297 = vmatprep.subr.bf16.mxu0 %v4344_v56  ;;  %3329 = vmatprep.subr.bf16.mxu1 %v4346_v57 }
 0x295   :  { %3299 = vmatpush1.bf16.msra.mxu0 %v4352_v2  ;;  %3331 = vmatpush1.bf16.msra.mxu1 %v4354_v4 }
 0x296   :  { %3301 = vmatprep.subr.bf16.mxu0 %v4358_v8  ;;  %3333 = vmatprep.subr.bf16.mxu1 %v4360_v9 }
 0x299   :  { %3303 = vmatpush1.bf16.msra.mxu0 %v4364_v17  ;;  %3335 = vmatpush1.bf16.msra.mxu1 %v4366_v18 }
 0x29a   :  { %3305 = vmatprep.subr.bf16.mxu0 %v4370_v22  ;;  %3337 = vmatprep.subr.bf16.mxu1 %v4372_v23 }
 0x29d   :  { %3307 = vmatpush1.bf16.msra.mxu0 %v4376_v32  ;;  %3339 = vmatpush1.bf16.msra.mxu1 %v4378_v35 }
 0x29e   :  { %3309 = vmatprep.subr.bf16.mxu0 %v4382_v38  ;;  %3341 = vmatprep.subr.bf16.mxu1 %v4384_v41 }
 0x2a1   :  { %3311 = vmatpush1.bf16.msra.mxu0 %v4388_v50  ;;  %3343 = vmatpush1.bf16.msra.mxu1 %v4390_v51 }
 0x2a2   :  { %3313 = vmatprep.subr.bf16.mxu0 %v4394_v55  ;;  %3345 = vmatprep.subr.bf16.mxu1 %v4396_v58 }
 0x2a5   :  { %3315 = vmatpush1.bf16.msra.mxu0 %v4400_v63  ;;  %3347 = vmatpush1.bf16.msra.mxu1 %v4402_v1 }
 0x2a6   :  { %3349 = vmatprep.subr.bf16.mxu0 %v4308_v62  ;;  %3381 = vmatprep.subr.bf16.mxu1 %v4310_v0 }
 0x33b   :  { %v606_v24 = vpop.f32.mrb[2].mxu0  ;;  %v683_v62 = vpop.f32.mrb[2].mxu1 }
 0x33c   :  { %v607_v27 = vadd.f32 %v606_v24, %v523_v15  ;;  %v684_v0 = vadd.f32 %v683_v62, %v531_v16  ;;  %v608_v28 = vpop.f32.mrb[3].mxu0  ;;  %v685_v29 = vpop.f32.mrb[3].mxu1 }
 0x33d   :  { %v609_v30 = vadd.f32 %v608_v28, %v527_v19  ;;  %v686_v31 = vadd.f32 %v685_v29, %v535_v20 }
 0x33e   :  { %694 = vst [vmem:[#allocation2] sm:$0xff] %v607_v27  ;;  %696 = vst [vmem:[#allocation2 + $0x10] sm:$0xff] %v684_v0 }
 0x33f   :  { %695 = vst [vmem:[#allocation2 + $0x8] sm:$0xff] %v609_v30  ;;  %697 = vst [vmem:[#allocation2 + $0x18] sm:$0xff] %v686_v31  ;;  %v612_v36 = vpop.f32.mrb[4].mxu0  ;;  %v689_v37 = vpop.f32.mrb[4].mxu1  ;;  %v703_v30 = vld [vmem:[%s4754_s11] sm:$0x3] }
 0x340   :  { %v613_v42 = vadd.f32 %v612_v36, %v523_v15  ;;  %v690_v3 = vadd.f32 %v689_v37, %v531_v16  ;;  %v614_v45 = vpop.f32.mrb[5].mxu0  ;;  %v691_v46 = vpop.f32.mrb[5].mxu1 }
 0x341   :  { %v615_v47 = vadd.f32 %v614_v45, %v527_v19  ;;  %v692_v48 = vadd.f32 %v691_v46, %v535_v20 }
 0x342   :  { %698 = vst [vmem:[#allocation2 + $0x20] sm:$0xff] %v613_v42  ;;  %700 = vst [vmem:[#allocation2 + $0x30] sm:$0xff] %v690_v3 }
 0x343   :  { %699 = vst [vmem:[#allocation2 + $0x28] sm:$0xff] %v615_v47  ;;  %701 = vst [vmem:[#allocation2 + $0x38] sm:$0xff] %v692_v48 }
 0x345   :  { %v704_v49 = vld [vmem:[#allocation2] sm:$0x3]  ;;  %v706_v16 = vld [vmem:[#allocation2 + $0x10] sm:$0x3] }
 0x346   :  { %v705_v61 = vld [vmem:[#allocation2 + $0x8] sm:$0x3]  ;;  %v707_v13 = vld [vmem:[#allocation2 + $0x18] sm:$0x3] }
 0x35b   :  { %v838_v54 = vpop.f32.mrb[6].mxu0  ;;  %v909_v59 = vpop.f32.mrb[6].mxu1 }
 0x35c   :  { %v914_v60 = vadd.f32 %v838_v54, %v704_v49  ;;  %v840_v5 = vpop.f32.mrb[7].mxu0  ;;  %v911_v6 = vpop.f32.mrb[7].mxu1  ;;  %v916_v20 = vadd.f32 %v909_v59, %v706_v16  ;;  %v1462_v16 = vld [vmem:[#allocation11 + $0x20] sm:$0xff] }
 0x35d   :  { %v915_v10 = vadd.f32 %v840_v5, %v705_v61  ;;  %v917_v15 = vadd.f32 %v911_v6, %v707_v13  ;;  %v1459_v6 = vld [vmem:[#allocation11 + $0x8] sm:$0xff]  ;;  %v1465_v13 = vld [vmem:[#allocation11 + $0x38] sm:$0xff] }
 0x35e   :  { %v2976_v11 = vmul.f32 -1.442695, %v914_v60 }
 0x35f   :  { %v2977_v12 = vmul.f32 -1.442695, %v915_v10  ;;  %v2978_v19 = vmul.f32 -1.442695, %v917_v15  ;;  %v1463_v10 = vld [vmem:[#allocation11 + $0x28] sm:$0xff]  ;;  %v1458_v15 = vld [vmem:[#allocation11] sm:$0xff] }
 0x360   :  { %3786 = vpow2.f32 %v2976_v11  ;;  %v1461_v11 = vld [vmem:[#allocation11 + $0x18] sm:$0xff] }
 0x361   :  { %3788 = vpow2.f32 %v2977_v12  ;;  %v4498_v12 = vpack.c.bf16 %v1463_v10, %v1459_v6  ;;  %v1503_v10 = vld [vmem:[#allocation11 + $0x168] sm:$0xff] }
 0x362   :  { %3790 = vpow2.f32 %v2978_v19  ;;  %v4500_v19 = vpack.c.bf16 %v1465_v13, %v1461_v11  ;;  %v1501_v11 = vld [vmem:[#allocation11 + $0x158] sm:$0xff] }
 0x363   :  { %3792 = vtanh.f32 %v916_v20  ;;  %v4502_v20 = vpack.c.bf16 %v1462_v16, %v1458_v15  ;;  %v1505_v13 = vld [vmem:[#allocation11 + $0x178] sm:$0xff] }
 0x364   :  { %v4559_v16 = vpack.c.bf16 %v1505_v13, %v1501_v11 }
 0x36a   :  { %v3787_v24 = vpop.eup %3786 }
 0x36b   :  { %v3789_v62 = vpop.eup %3788  ;;  %v921_v27 = vadd.f32 1.0, %v3787_v24  ;;  %v1460_v24 = vld [vmem:[#allocation11 + $0x10] sm:$0xff] }
 0x36c   :  { %v927_v0 = vadd.f32 1.0, %v3789_v62  ;;  %v3791_v28 = vpop.eup %3790  ;;  %v1464_v62 = vld [vmem:[#allocation11 + $0x30] sm:$0xff] }
 0x36d   :  { %3794 = vrcp.f32 %v921_v27  ;;  %v3793_v29 = vpop.eup %3792  ;;  %v934_v42 = vadd.f32 1.0, %v3791_v28  ;;  %v4505_v27 = vpack.c.bf16 %v1464_v62, %v1460_v24  ;;  %v1471_v28 = vld [vmem:[#allocation11 + $0x68] sm:$0xff]  ;;  %v1498_v24 = vld [vmem:[#allocation11 + $0x140] sm:$0xff] }
 0x36e   :  { %3796 = vrcp.f32 %v927_v0  ;;  %v1467_v0 = vld [vmem:[#allocation11 + $0x48] sm:$0xff]  ;;  %v1502_v62 = vld [vmem:[#allocation11 + $0x160] sm:$0xff] }
 0x36f   :  { %3798 = vrcp.f32 %v934_v42 }
 0x377   :  { %v3795_v31 = vpop.eup %3794 }
 0x378   :  { %v3797_v36 = vpop.eup %3796  ;;  %v938_v37 = vmul.f32 %v3795_v31, %v3793_v29  ;;  %v1469_v29 = vld [vmem:[#allocation11 + $0x58] sm:$0xff] }
 0x379   :  { %v937_v3 = vmul.f32 %v3797_v36, %v703_v30  ;;  %v3799_v46 = vpop.eup %3798  ;;  %v4510_v30 = vpack.c.bf16 %v1471_v28, %v1467_v0  ;;  %v1473_v31 = vld [vmem:[#allocation11 + $0x78] sm:$0xff]  ;;  %v1466_v36 = vld [vmem:[#allocation11 + $0x40] sm:$0xff]  ;;  %v1500_v0 = vld [vmem:[#allocation11 + $0x150] sm:$0xff]  ;;  %v4562_v28 = vpack.c.bf16 %v1502_v62, %v1498_v24 }
 0x37a   :  { %v4512_v42 = vpack.c.bf16 %v1473_v31, %v1469_v29  ;;  %v1504_v29 = vld [vmem:[#allocation11 + $0x170] sm:$0xff]  ;;  %v1507_v31 = vld [vmem:[#allocation11 + $0x188] sm:$0xff]  ;;  %v1198_v24 = vld [vmem:[#allocation2 + $0x8] sm:$0x30] }
 0x37b   :  { %v4457_v45 = vadd.f32 %v938_v37, %v937_v3  ;;  %v1470_v37 = vld [vmem:[#allocation11 + $0x60] sm:$0xff] }
 0x37c   :  { %v4514_v3 = vpack.c.bf16 %v1470_v37, %v1466_v36  ;;  %v1511_v36 = vld [vmem:[#allocation11 + $0x1a8] sm:$0xff]  ;;  %v4566_v37 = vpack.c.bf16 %v1504_v29, %v1500_v0 }
 0x37d   :  { %3800 = vtanh.f32 %v4457_v45 }
 0x387   :  { %v3801_v47 = vpop.eup %3800 }
 0x388   :  { %v941_v48 = vmul.f32 %v3801_v47, %v3799_v46  ;;  %v1472_v46 = vld [vmem:[#allocation11 + $0x70] sm:$0xff] }
 0x38a   :  { %942 = vst [vmem:[#allocation3] sm:$0x3] %v941_v48  ;;  %1076 = vmatmul.mubr.f32.vlgmr.msra.gmra.mrb[8].mxu0 %v941_v48  ;;  %1147 = vmatmul.mubr.f32.vlgmr.msra.gmra.mrb[8].mxu1 %v941_v48  ;;  %v1475_v48 = vld [vmem:[#allocation11 + $0x88] sm:$0xff] }
 0x38b   :  { %3351 = vmatpush1.bf16.msra.mxu0 %v4314_v25  ;;  %3383 = vmatpush1.bf16.msra.mxu1 %v4316_v26 }
 0x38c   :  { %3353 = vmatprep.subr.bf16.mxu0 %v4318_v33  ;;  %3385 = vmatprep.subr.bf16.mxu1 %v4320_v34 }
 0x38d   :  { %1332 = vmatprep.mubr.f32.mxu0 %v4089_v14  ;;  %1403 = vmatprep.mubr.f32.mxu1 %v4089_v14 }
 0x38f   :  { %3355 = vmatpush1.bf16.msra.mxu0 %v4324_v39  ;;  %3387 = vmatpush1.bf16.msra.mxu1 %v4326_v40  ;;  %v943_v40 = vld [vmem:[#allocation2] sm:$0xc] }
 0x390   :  { %3357 = vmatprep.subr.bf16.mxu0 %v4330_v43  ;;  %3389 = vmatprep.subr.bf16.mxu1 %v4332_v44 }
 0x393   :  { %3359 = vmatpush1.bf16.msra.mxu0 %v4338_v52  ;;  %3391 = vmatpush1.bf16.msra.mxu1 %v4340_v53  ;;  %v944_v52 = vld [vmem:[#allocation2 + $0x8] sm:$0xc] }
 0x394   :  { %3361 = vmatprep.subr.bf16.mxu0 %v4344_v56  ;;  %3393 = vmatprep.subr.bf16.mxu1 %v4346_v57 }
 0x397   :  { %3363 = vmatpush1.bf16.msra.mxu0 %v4352_v2  ;;  %3395 = vmatpush1.bf16.msra.mxu1 %v4354_v4  ;;  %v946_v4 = vld [vmem:[#allocation2 + $0x18] sm:$0xc] }
 0x398   :  { %3365 = vmatprep.subr.bf16.mxu0 %v4358_v8  ;;  %3397 = vmatprep.subr.bf16.mxu1 %v4360_v9 }
 0x39b   :  { %3367 = vmatpush1.bf16.msra.mxu0 %v4364_v17  ;;  %3399 = vmatpush1.bf16.msra.mxu1 %v4366_v18  ;;  %v945_v17 = vld [vmem:[#allocation2 + $0x10] sm:$0xc] }
 0x39c   :  { %3369 = vmatprep.subr.bf16.mxu0 %v4370_v22  ;;  %3401 = vmatprep.subr.bf16.mxu1 %v4372_v23 }
 0x39f   :  { %3371 = vmatpush1.bf16.msra.mxu0 %v4376_v32  ;;  %3403 = vmatpush1.bf16.msra.mxu1 %v4378_v35 }
 0x3a0   :  { %3373 = vmatprep.subr.bf16.mxu0 %v4382_v38  ;;  %3405 = vmatprep.subr.bf16.mxu1 %v4384_v41 }
 0x3a3   :  { %3375 = vmatpush1.bf16.msra.mxu0 %v4388_v50  ;;  %3407 = vmatpush1.bf16.msra.mxu1 %v4390_v51 }
 0x3a4   :  { %3377 = vmatprep.subr.bf16.mxu0 %v4394_v55  ;;  %3409 = vmatprep.subr.bf16.mxu1 %v4396_v58  ;;  %v1189_v55 = vrot.slane %v4457_v45, 6  ;;  %v1468_v45 = vld [vmem:[#allocation11 + $0x50] sm:$0xff] }
 0x3a5   :  { %v4517_v47 = vpack.c.bf16 %v1472_v46, %v1468_v45  ;;  %v4568_v45 = vpack.c.bf16 %v1511_v36, %v1507_v31  ;;  %v1509_v46 = vld [vmem:[#allocation11 + $0x198] sm:$0xff]  ;;  %v1200_v36 = vld [vmem:[#allocation2 + $0x18] sm:$0x30] }
 0x3a7   :  { %3379 = vmatpush1.bf16.msra.mxu0 %v4400_v63  ;;  %3411 = vmatpush1.bf16.msra.mxu1 %v4402_v1 }
 0x3a8   :  { %3413 = vmatprep.subr.bf16.mxu0 %v4498_v12  ;;  %3445 = vmatprep.subr.bf16.mxu1 %v4500_v19 }
 0x45d   :  { %v1077_v25 = vpop.f32.mrb[8].mxu0  ;;  %v1148_v26 = vpop.f32.mrb[8].mxu1 }
 0x45e   :  { %v1157_v33 = vrot.slane %v1077_v25, 6  ;;  %v1079_v34 = vpop.f32.mrb[9].mxu0  ;;  %v1150_v39 = vpop.f32.mrb[9].mxu1  ;;  %v1159_v9 = vrot.slane %v1148_v26, 6  ;;  %v1479_v25 = vld [vmem:[#allocation11 + $0xa8] sm:$0xff]  ;;  %v1477_v26 = vld [vmem:[#allocation11 + $0x98] sm:$0xff] }
 0x45f   :  { %v1158_v43 = vrot.slane %v1079_v34, 6  ;;  %v1160_v2 = vrot.slane %v1150_v39, 6  ;;  %v1481_v34 = vld [vmem:[#allocation11 + $0xb8] sm:$0xff]  ;;  %v1474_v39 = vld [vmem:[#allocation11 + $0x80] sm:$0xff] }
 0x460   :  { %v1165_v44 = vadd.f32 %v1157_v33, %v943_v40  ;;  %v1167_v22 = vadd.f32 %v1159_v9, %v945_v17  ;;  %v4522_v33 = vpack.c.bf16 %v1479_v25, %v1475_v48  ;;  %v1478_v40 = vld [vmem:[#allocation11 + $0xa0] sm:$0xff]  ;;  %v1489_v9 = vld [vmem:[#allocation11 + $0xf8] sm:$0xff] }
 0x461   :  { %v1166_v53 = vadd.f32 %v1158_v43, %v944_v52  ;;  %v1168_v8 = vadd.f32 %v1160_v2, %v946_v4  ;;  %v4524_v43 = vpack.c.bf16 %v1481_v34, %v1477_v26  ;;  %v1476_v52 = vld [vmem:[#allocation11 + $0x90] sm:$0xff]  ;;  %v1487_v2 = vld [vmem:[#allocation11 + $0xe8] sm:$0xff]  ;;  %v1485_v4 = vld [vmem:[#allocation11 + $0xd8] sm:$0xff] }
 0x462   :  { %v2979_v56 = vmul.f32 -1.442695, %v1165_v44  ;;  %v4526_v44 = vpack.c.bf16 %v1478_v40, %v1474_v39  ;;  %v1482_v17 = vld [vmem:[#allocation11 + $0xc0] sm:$0xff]  ;;  %v1513_v48 = vld [vmem:[#allocation11 + $0x1b8] sm:$0xff]  ;;  %v1508_v39 = vld [vmem:[#allocation11 + $0x190] sm:$0xff] }
 0x463   :  { %v2980_v57 = vmul.f32 -1.442695, %v1166_v53  ;;  %v2981_v18 = vmul.f32 -1.442695, %v1168_v8  ;;  %v1480_v53 = vld [vmem:[#allocation11 + $0xb0] sm:$0xff]  ;;  %v1506_v25 = vld [vmem:[#allocation11 + $0x180] sm:$0xff]  ;;  %v4570_v26 = vpack.c.bf16 %v1513_v48, %v1509_v46 }
 0x464   :  { %3802 = vpow2.f32 %v2979_v56  ;;  %v4529_v56 = vpack.c.bf16 %v1480_v53, %v1476_v52  ;;  %v1510_v34 = vld [vmem:[#allocation11 + $0x1a0] sm:$0xff]  ;;  %v1512_v40 = vld [vmem:[#allocation11 + $0x1b0] sm:$0xff]  ;;  %v1515_v53 = vld [vmem:[#allocation11 + $0x1c8] sm:$0xff] }
 0x465   :  { %3804 = vpow2.f32 %v2980_v57  ;;  %v1483_v57 = vld [vmem:[#allocation11 + $0xc8] sm:$0xff]  ;;  %v4573_v52 = vpack.c.bf16 %v1510_v34, %v1506_v25  ;;  %v1199_v25 = vld [vmem:[#allocation2 + $0x10] sm:$0x30] }
 0x466   :  { %3806 = vpow2.f32 %v2981_v18  ;;  %v4534_v8 = vpack.c.bf16 %v1487_v2, %v1483_v57  ;;  %v1486_v18 = vld [vmem:[#allocation11 + $0xe0] sm:$0xff]  ;;  %v1519_v57 = vld [vmem:[#allocation11 + $0x1e8] sm:$0xff]  ;;  %v1517_v2 = vld [vmem:[#allocation11 + $0x1d8] sm:$0xff] }
 0x467   :  { %3808 = vtanh.f32 %v1167_v22  ;;  %v4536_v22 = vpack.c.bf16 %v1489_v9, %v1485_v4  ;;  %v4577_v4 = vpack.c.bf16 %v1512_v40, %v1508_v39  ;;  %v4579_v9 = vpack.c.bf16 %v1519_v57, %v1515_v53 }
 0x46e   :  { %v3803_v23 = vpop.eup %3802 }
 0x46f   :  { %v3805_v32 = vpop.eup %3804  ;;  %v1172_v35 = vadd.f32 1.0, %v3803_v23  ;;  %v4538_v23 = vpack.c.bf16 %v1486_v18, %v1482_v17  ;;  %v1521_v17 = vld [vmem:[#allocation11 + $0x1f8] sm:$0xff]  ;;  %v1514_v18 = vld [vmem:[#allocation11 + $0x1c0] sm:$0xff] }
 0x470   :  { %v1178_v38 = vadd.f32 1.0, %v3805_v32  ;;  %v3807_v41 = vpop.eup %3806  ;;  %v1484_v32 = vld [vmem:[#allocation11 + $0xd0] sm:$0xff] }
 0x471   :  { %3810 = vrcp.f32 %v1172_v35  ;;  %v3809_v50 = vpop.eup %3808  ;;  %v1185_v1 = vadd.f32 1.0, %v3807_v41  ;;  %v1488_v35 = vld [vmem:[#allocation11 + $0xf0] sm:$0xff]  ;;  %v1491_v41 = vld [vmem:[#allocation11 + $0x108] sm:$0xff] }
 0x472   :  { %3812 = vrcp.f32 %v1178_v38  ;;  %v4541_v38 = vpack.c.bf16 %v1488_v35, %v1484_v32  ;;  %v1518_v32 = vld [vmem:[#allocation11 + $0x1e0] sm:$0xff]  ;;  %v4582_v35 = vpack.c.bf16 %v1521_v17, %v1517_v2 }
 0x473   :  { %3814 = vrcp.f32 %v1185_v1  ;;  %v1494_v1 = vld [vmem:[#allocation11 + $0x120] sm:$0xff] }
 0x47b   :  { %v3811_v51 = vpop.eup %3810 }
 0x47c   :  { %v3813_v58 = vpop.eup %3812  ;;  %v1192_v63 = vmul.f32 %v3811_v51, %v3809_v50  ;;  %v1495_v50 = vld [vmem:[#allocation11 + $0x128] sm:$0xff]  ;;  %v1493_v51 = vld [vmem:[#allocation11 + $0x118] sm:$0xff] }
 0x47d   :  { %v1191_v49 = vmul.f32 %v3813_v58, %v1189_v55  ;;  %v3815_v59 = vpop.eup %3814  ;;  %v4546_v55 = vpack.c.bf16 %v1495_v50, %v1491_v41  ;;  %v1497_v58 = vld [vmem:[#allocation11 + $0x138] sm:$0xff]  ;;  %v1516_v41 = vld [vmem:[#allocation11 + $0x1d0] sm:$0xff] }
 0x47e   :  { %v1520_v50 = vld [vmem:[#allocation11 + $0x1f0] sm:$0xff] }
 0x47f   :  { %v4493_v54 = vadd.f32 %v1192_v63, %v1191_v49  ;;  %v1490_v63 = vld [vmem:[#allocation11 + $0x100] sm:$0xff]  ;;  %v4548_v49 = vpack.c.bf16 %v1497_v58, %v1493_v51  ;;  %v4585_v51 = vpack.c.bf16 %v1518_v32, %v1514_v18  ;;  %v4589_v58 = vpack.c.bf16 %v1520_v50, %v1516_v41 }
 0x481   :  { %3816 = vtanh.f32 %v4493_v54  ;;  %v1446_v41 = vrot.slane %v4493_v54, 6 }
 0x48b   :  { %v3817_v60 = vpop.eup %3816 }
 0x48c   :  { %v1195_v61 = vmul.f32 %v3817_v60, %v3815_v59  ;;  %v4550_v59 = vpack.c.bf16 %v1494_v1, %v1490_v63  ;;  %v1492_v60 = vld [vmem:[#allocation11 + $0x110] sm:$0xff] }
 0x48e   :  { %1196 = vst [vmem:[#allocation3] sm:$0xc] %v1195_v61  ;;  %v1266_v5 = vrot.slane %v1195_v61, 2  ;;  %v1496_v61 = vld [vmem:[#allocation11 + $0x130] sm:$0xff] }
 0x48f   :  { %v4553_v6 = vpack.c.bf16 %v1496_v61, %v1492_v60 }
 0x490   :  { %1333 = vmatmul.mubr.f32.vlgmr.msra.gmra.mrb[10].mxu0 %v1266_v5  ;;  %1404 = vmatmul.mubr.f32.vlgmr.msra.gmra.mrb[10].mxu1 %v1266_v5  ;;  %v1499_v5 = vld [vmem:[#allocation11 + $0x148] sm:$0xff] }
 0x491   :  { %1589 = vmatprep.mubr.f32.mxu0 %v4089_v14  ;;  %1660 = vmatprep.mubr.f32.mxu1 %v4089_v14  ;;  %v4557_v15 = vpack.c.bf16 %v1503_v10, %v1499_v5  ;;  %v1197_v10 = vld [vmem:[#allocation2] sm:$0x30] }
 0x492   :  { %3415 = vmatpush1.bf16.msra.mxu0 %v4502_v20  ;;  %3447 = vmatpush1.bf16.msra.mxu1 %v4505_v27 }
 0x493   :  { %3417 = vmatprep.subr.bf16.mxu0 %v4510_v30  ;;  %3449 = vmatprep.subr.bf16.mxu1 %v4512_v42 }
 0x496   :  { %3419 = vmatpush1.bf16.msra.mxu0 %v4514_v3  ;;  %3451 = vmatpush1.bf16.msra.mxu1 %v4517_v47 }
 0x497   :  { %3421 = vmatprep.subr.bf16.mxu0 %v4522_v33  ;;  %3453 = vmatprep.subr.bf16.mxu1 %v4524_v43 }
 0x49a   :  { %3423 = vmatpush1.bf16.msra.mxu0 %v4526_v44  ;;  %3455 = vmatpush1.bf16.msra.mxu1 %v4529_v56 }
 0x49b   :  { %3425 = vmatprep.subr.bf16.mxu0 %v4534_v8  ;;  %3457 = vmatprep.subr.bf16.mxu1 %v4536_v22 }
 0x49e   :  { %3427 = vmatpush1.bf16.msra.mxu0 %v4538_v23  ;;  %3459 = vmatpush1.bf16.msra.mxu1 %v4541_v38 }
 0x49f   :  { %3429 = vmatprep.subr.bf16.mxu0 %v4546_v55  ;;  %3461 = vmatprep.subr.bf16.mxu1 %v4548_v49 }
 0x4a2   :  { %3431 = vmatpush1.bf16.msra.mxu0 %v4550_v59  ;;  %3463 = vmatpush1.bf16.msra.mxu1 %v4553_v6 }
 0x4a3   :  { %3433 = vmatprep.subr.bf16.mxu0 %v4557_v15  ;;  %3465 = vmatprep.subr.bf16.mxu1 %v4559_v16 }
 0x4a6   :  { %3435 = vmatpush1.bf16.msra.mxu0 %v4562_v28  ;;  %3467 = vmatpush1.bf16.msra.mxu1 %v4566_v37 }
 0x4a7   :  { %3437 = vmatprep.subr.bf16.mxu0 %v4568_v45  ;;  %3469 = vmatprep.subr.bf16.mxu1 %v4570_v26 }
 0x4aa   :  { %3439 = vmatpush1.bf16.msra.mxu0 %v4573_v52  ;;  %3471 = vmatpush1.bf16.msra.mxu1 %v4577_v4 }
 0x4ab   :  { %3441 = vmatprep.subr.bf16.mxu0 %v4579_v9  ;;  %3473 = vmatprep.subr.bf16.mxu1 %v4582_v35 }
 0x4ae   :  { %3443 = vmatpush1.bf16.msra.mxu0 %v4585_v51  ;;  %3475 = vmatpush1.bf16.msra.mxu1 %v4589_v58 }
 0x4af   :  { %3477 = vmatprep.subr.bf16.mxu0 %v4498_v12  ;;  %3509 = vmatprep.subr.bf16.mxu1 %v4500_v19 }
 0x563   :  { %v1334_v63 = vpop.f32.mrb[10].mxu0  ;;  %v1405_v1 = vpop.f32.mrb[10].mxu1 }
 0x564   :  { %v1414_v60 = vrot.slane %v1334_v63, 4  ;;  %v1336_v61 = vpop.f32.mrb[11].mxu0  ;;  %v1407_v5 = vpop.f32.mrb[11].mxu1  ;;  %v1416_v48 = vrot.slane %v1405_v1, 4 }
 0x565   :  { %v1415_v11 = vrot.slane %v1336_v61, 4  ;;  %v1417_v31 = vrot.slane %v1407_v5, 4 }
 0x566   :  { %v1422_v13 = vadd.f32 %v1414_v60, %v1197_v10  ;;  %v1424_v39 = vadd.f32 %v1416_v48, %v1199_v25  ;;  %v1455_v48 = vld [vmem:[#allocation2 + $0x8] sm:$0xc0] }
 0x567   :  { %v1423_v62 = vadd.f32 %v1415_v11, %v1198_v24  ;;  %v1425_v46 = vadd.f32 %v1417_v31, %v1200_v36  ;;  %v1454_v31 = vld [vmem:[#allocation2] sm:$0xc0] }
 0x568   :  { %v2982_v0 = vmul.f32 -1.442695, %v1422_v13 }
 0x569   :  { %v2983_v29 = vmul.f32 -1.442695, %v1423_v62  ;;  %v2984_v34 = vmul.f32 -1.442695, %v1425_v46 }
 0x56a   :  { %3818 = vpow2.f32 %v2982_v0 }
 0x56b   :  { %3820 = vpow2.f32 %v2983_v29 }
 0x56c   :  { %3822 = vpow2.f32 %v2984_v34 }
 0x56d   :  { %3824 = vtanh.f32 %v1424_v39 }
 0x574   :  { %v3819_v40 = vpop.eup %3818 }
 0x575   :  { %v3821_v53 = vpop.eup %3820  ;;  %v1429_v57 = vadd.f32 1.0, %v3819_v40 }
 0x576   :  { %v1435_v2 = vadd.f32 1.0, %v3821_v53  ;;  %v3823_v17 = vpop.eup %3822  ;;  %v1457_v53 = vld [vmem:[#allocation2 + $0x18] sm:$0xc0] }
 0x577   :  { %3826 = vrcp.f32 %v1429_v57  ;;  %v3825_v18 = vpop.eup %3824  ;;  %v1442_v60 = vadd.f32 1.0, %v3823_v17  ;;  %v1456_v17 = vld [vmem:[#allocation2 + $0x10] sm:$0xc0] }
 0x578   :  { %3828 = vrcp.f32 %v1435_v2 }
 0x579   :  { %3830 = vrcp.f32 %v1442_v60 }
 0x581   :  { %v3827_v32 = vpop.eup %3826 }
 0x582   :  { %v3829_v50 = vpop.eup %3828  ;;  %v1449_v63 = vmul.f32 %v3827_v32, %v3825_v18 }
 0x583   :  { %v1448_v1 = vmul.f32 %v3829_v50, %v1446_v41  ;;  %v3831_v5 = vpop.eup %3830 }
 0x585   :  { %v4597_v61 = vadd.f32 %v1449_v63, %v1448_v1 }
 0x587   :  { %3832 = vtanh.f32 %v4597_v61 }
 0x591   :  { %v3833_v10 = vpop.eup %3832 }
 0x592   :  { %v1452_v11 = vmul.f32 %v3833_v10, %v3831_v5 }
 0x594   :  { %1453 = vst [vmem:[#allocation3] sm:$0x30] %v1452_v11  ;;  %v1523_v13 = vrot.slane %v1452_v11, 4  ;;  %v1703_v11 = vrot.slane %v4597_v61, 6  ;;  %v1711_v61 = vld [vmem:[#allocation2 + $0x20] sm:$0x3] }
 0x596   :  { %1590 = vmatmul.mubr.f32.vlgmr.msra.gmra.mrb[12].mxu0 %v1523_v13  ;;  %1661 = vmatmul.mubr.f32.vlgmr.msra.gmra.mrb[12].mxu1 %v1523_v13 }
 0x597   :  { %3479 = vmatpush1.bf16.msra.mxu0 %v4502_v20  ;;  %3511 = vmatpush1.bf16.msra.mxu1 %v4505_v27 }
 0x598   :  { %3481 = vmatprep.subr.bf16.mxu0 %v4510_v30  ;;  %3513 = vmatprep.subr.bf16.mxu1 %v4512_v42 }
 0x599   :  { %1846 = vmatprep.mubr.f32.mxu0 %v4089_v14  ;;  %1917 = vmatprep.mubr.f32.mxu1 %v4089_v14 }
 0x59b   :  { %3483 = vmatpush1.bf16.msra.mxu0 %v4514_v3  ;;  %3515 = vmatpush1.bf16.msra.mxu1 %v4517_v47 }
 0x59c   :  { %3485 = vmatprep.subr.bf16.mxu0 %v4522_v33  ;;  %3517 = vmatprep.subr.bf16.mxu1 %v4524_v43 }
 0x59f   :  { %3487 = vmatpush1.bf16.msra.mxu0 %v4526_v44  ;;  %3519 = vmatpush1.bf16.msra.mxu1 %v4529_v56 }
 0x5a0   :  { %3489 = vmatprep.subr.bf16.mxu0 %v4534_v8  ;;  %3521 = vmatprep.subr.bf16.mxu1 %v4536_v22 }
 0x5a3   :  { %3491 = vmatpush1.bf16.msra.mxu0 %v4538_v23  ;;  %3523 = vmatpush1.bf16.msra.mxu1 %v4541_v38 }
 0x5a4   :  { %3493 = vmatprep.subr.bf16.mxu0 %v4546_v55  ;;  %3525 = vmatprep.subr.bf16.mxu1 %v4548_v49 }
 0x5a7   :  { %3495 = vmatpush1.bf16.msra.mxu0 %v4550_v59  ;;  %3527 = vmatpush1.bf16.msra.mxu1 %v4553_v6 }
 0x5a8   :  { %3497 = vmatprep.subr.bf16.mxu0 %v4557_v15  ;;  %3529 = vmatprep.subr.bf16.mxu1 %v4559_v16 }
 0x5ab   :  { %3499 = vmatpush1.bf16.msra.mxu0 %v4562_v28  ;;  %3531 = vmatpush1.bf16.msra.mxu1 %v4566_v37 }
 0x5ac   :  { %3501 = vmatprep.subr.bf16.mxu0 %v4568_v45  ;;  %3533 = vmatprep.subr.bf16.mxu1 %v4570_v26 }
 0x5af   :  { %3503 = vmatpush1.bf16.msra.mxu0 %v4573_v52  ;;  %3535 = vmatpush1.bf16.msra.mxu1 %v4577_v4 }
 0x5b0   :  { %3505 = vmatprep.subr.bf16.mxu0 %v4579_v9  ;;  %3537 = vmatprep.subr.bf16.mxu1 %v4582_v35 }
 0x5b3   :  { %3507 = vmatpush1.bf16.msra.mxu0 %v4585_v51  ;;  %3539 = vmatpush1.bf16.msra.mxu1 %v4589_v58 }
 0x5b4   :  { %3541 = vmatprep.subr.bf16.mxu0 %v4498_v12  ;;  %3573 = vmatprep.subr.bf16.mxu1 %v4500_v19 }
 0x669   :  { %v1591_v54 = vpop.f32.mrb[12].mxu0  ;;  %v1662_v24 = vpop.f32.mrb[12].mxu1 }
 0x66a   :  { %v1671_v62 = vrot.slane %v1591_v54, 2  ;;  %v1593_v0 = vpop.f32.mrb[13].mxu0  ;;  %v1664_v29 = vpop.f32.mrb[13].mxu1  ;;  %v1673_v2 = vrot.slane %v1662_v24, 2 }
 0x66b   :  { %v1672_v36 = vrot.slane %v1593_v0, 2  ;;  %v1674_v40 = vrot.slane %v1664_v29, 2 }
 0x66c   :  { %v1679_v46 = vadd.f32 %v1671_v62, %v1454_v31  ;;  %v1681_v32 = vadd.f32 %v1673_v2, %v1456_v17 }
 0x66d   :  { %v1680_v25 = vadd.f32 %v1672_v36, %v1455_v48  ;;  %v1682_v57 = vadd.f32 %v1674_v40, %v1457_v53 }
 0x66e   :  { %v2985_v34 = vmul.f32 -1.442695, %v1679_v46 }
 0x66f   :  { %v2986_v39 = vmul.f32 -1.442695, %v1680_v25  ;;  %v2987_v18 = vmul.f32 -1.442695, %v1682_v57 }
 0x670   :  { %3834 = vpow2.f32 %v2985_v34 }
 0x671   :  { %3836 = vpow2.f32 %v2986_v39  ;;  %v1712_v39 = vld [vmem:[#allocation2 + $0x28] sm:$0x3] }
 0x672   :  { %3838 = vpow2.f32 %v2987_v18  ;;  %v1714_v18 = vld [vmem:[#allocation2 + $0x38] sm:$0x3] }
 0x673   :  { %3840 = vtanh.f32 %v1681_v32 }
 0x67a   :  { %v3835_v41 = vpop.eup %3834 }
 0x67b   :  { %v3837_v50 = vpop.eup %3836  ;;  %v1686_v63 = vadd.f32 1.0, %v3835_v41  ;;  %v1713_v41 = vld [vmem:[#allocation2 + $0x30] sm:$0x3] }
 0x67c   :  { %v1692_v60 = vadd.f32 1.0, %v3837_v50  ;;  %v3839_v1 = vpop.eup %3838 }
 0x67d   :  { %3842 = vrcp.f32 %v1686_v63  ;;  %v3841_v5 = vpop.eup %3840  ;;  %v1699_v62 = vadd.f32 1.0, %v3839_v1 }
 0x67e   :  { %3844 = vrcp.f32 %v1692_v60 }
 0x67f   :  { %3846 = vrcp.f32 %v1699_v62 }
 0x687   :  { %v3843_v10 = vpop.eup %3842 }
 0x688   :  { %v3845_v13 = vpop.eup %3844  ;;  %v1706_v54 = vmul.f32 %v3843_v10, %v3841_v5 }
 0x689   :  { %v1705_v24 = vmul.f32 %v3845_v13, %v1703_v11  ;;  %v3847_v29 = vpop.eup %3846 }
 0x68b   :  { %v4635_v0 = vadd.f32 %v1706_v54, %v1705_v24 }
 0x68d   :  { %3848 = vtanh.f32 %v4635_v0  ;;  %v1948_v13 = vrot.slane %v4635_v0, 6 }
 0x697   :  { %v3849_v31 = vpop.eup %3848 }
 0x698   :  { %v1709_v36 = vmul.f32 %v3849_v31, %v3847_v29 }
 0x69a   :  { %1710 = vst [vmem:[#allocation3] sm:$0xc0] %v1709_v36  ;;  %v1780_v46 = vrot.slane %v1709_v36, 6 }
 0x69c   :  { %1847 = vmatmul.mubr.f32.vlgmr.msra.gmra.mrb[14].mxu0 %v1780_v46  ;;  %1918 = vmatmul.mubr.f32.vlgmr.msra.gmra.mrb[14].mxu1 %v1780_v46 }
 0x69d   :  { %3543 = vmatpush1.bf16.msra.mxu0 %v4502_v20  ;;  %3575 = vmatpush1.bf16.msra.mxu1 %v4505_v27 }
 0x69e   :  { %3545 = vmatprep.subr.bf16.mxu0 %v4510_v30  ;;  %3577 = vmatprep.subr.bf16.mxu1 %v4512_v42 }
 0x69f   :  { %2088 = vmatprep.mubr.f32.mxu0 %v4089_v14  ;;  %2159 = vmatprep.mubr.f32.mxu1 %v4089_v14 }
 0x6a1   :  { %3547 = vmatpush1.bf16.msra.mxu0 %v4514_v3  ;;  %3579 = vmatpush1.bf16.msra.mxu1 %v4517_v47 }
 0x6a2   :  { %3549 = vmatprep.subr.bf16.mxu0 %v4522_v33  ;;  %3581 = vmatprep.subr.bf16.mxu1 %v4524_v43 }
 0x6a5   :  { %3551 = vmatpush1.bf16.msra.mxu0 %v4526_v44  ;;  %3583 = vmatpush1.bf16.msra.mxu1 %v4529_v56 }
 0x6a6   :  { %3553 = vmatprep.subr.bf16.mxu0 %v4534_v8  ;;  %3585 = vmatprep.subr.bf16.mxu1 %v4536_v22 }
 0x6a9   :  { %3555 = vmatpush1.bf16.msra.mxu0 %v4538_v23  ;;  %3587 = vmatpush1.bf16.msra.mxu1 %v4541_v38 }
 0x6aa   :  { %3557 = vmatprep.subr.bf16.mxu0 %v4546_v55  ;;  %3589 = vmatprep.subr.bf16.mxu1 %v4548_v49 }
 0x6ad   :  { %3559 = vmatpush1.bf16.msra.mxu0 %v4550_v59  ;;  %3591 = vmatpush1.bf16.msra.mxu1 %v4553_v6 }
 0x6ae   :  { %3561 = vmatprep.subr.bf16.mxu0 %v4557_v15  ;;  %3593 = vmatprep.subr.bf16.mxu1 %v4559_v16 }
 0x6b1   :  { %3563 = vmatpush1.bf16.msra.mxu0 %v4562_v28  ;;  %3595 = vmatpush1.bf16.msra.mxu1 %v4566_v37 }
 0x6b2   :  { %3565 = vmatprep.subr.bf16.mxu0 %v4568_v45  ;;  %3597 = vmatprep.subr.bf16.mxu1 %v4570_v26 }
 0x6b5   :  { %3567 = vmatpush1.bf16.msra.mxu0 %v4573_v52  ;;  %3599 = vmatpush1.bf16.msra.mxu1 %v4577_v4 }
 0x6b6   :  { %3569 = vmatprep.subr.bf16.mxu0 %v4579_v9  ;;  %3601 = vmatprep.subr.bf16.mxu1 %v4582_v35 }
 0x6b9   :  { %3571 = vmatpush1.bf16.msra.mxu0 %v4585_v51  ;;  %3603 = vmatpush1.bf16.msra.mxu1 %v4589_v58 }
 0x6ba   :  { %3605 = vmatprep.subr.bf16.mxu0 %v4498_v12  ;;  %3637 = vmatprep.subr.bf16.mxu1 %v4500_v19 }
 0x76f   :  { %v1848_v48 = vpop.f32.mrb[14].mxu0  ;;  %v1919_v25 = vpop.f32.mrb[14].mxu1 }
 0x770   :  { %v1924_v34 = vadd.f32 %v1848_v48, %v1711_v61  ;;  %v1850_v40 = vpop.f32.mrb[15].mxu0  ;;  %v1921_v53 = vpop.f32.mrb[15].mxu1  ;;  %v1926_v63 = vadd.f32 %v1919_v25, %v1713_v41  ;;  %v2475_v41 = vld [vmem:[#allocation11 + $0x20] sm:$0xff] }
 0x771   :  { %v1925_v57 = vadd.f32 %v1850_v40, %v1712_v39  ;;  %v1927_v32 = vadd.f32 %v1921_v53, %v1714_v18  ;;  %v2472_v53 = vld [vmem:[#allocation11 + $0x8] sm:$0xff]  ;;  %v2478_v18 = vld [vmem:[#allocation11 + $0x38] sm:$0xff] }
 0x772   :  { %v2988_v2 = vmul.f32 -1.442695, %v1924_v34 }
 0x773   :  { %v2989_v17 = vmul.f32 -1.442695, %v1925_v57  ;;  %v2990_v50 = vmul.f32 -1.442695, %v1927_v32  ;;  %v2476_v57 = vld [vmem:[#allocation11 + $0x28] sm:$0xff]  ;;  %v2471_v32 = vld [vmem:[#allocation11] sm:$0xff] }
 0x774   :  { %3850 = vpow2.f32 %v2988_v2  ;;  %v2474_v2 = vld [vmem:[#allocation11 + $0x18] sm:$0xff] }
 0x775   :  { %3852 = vpow2.f32 %v2989_v17  ;;  %v3668_v17 = vpack.c.bf16 %v2476_v57, %v2472_v53  ;;  %v2516_v53 = vld [vmem:[#allocation11 + $0x168] sm:$0xff]  ;;  %v2514_v57 = vld [vmem:[#allocation11 + $0x158] sm:$0xff] }
 0x776   :  { %3854 = vpow2.f32 %v2990_v50  ;;  %v3700_v50 = vpack.c.bf16 %v2478_v18, %v2474_v2  ;;  %v2518_v2 = vld [vmem:[#allocation11 + $0x178] sm:$0xff] }
 0x777   :  { %3856 = vtanh.f32 %v1926_v63  ;;  %v3670_v63 = vpack.c.bf16 %v2475_v41, %v2471_v32  ;;  %v3720_v18 = vpack.c.bf16 %v2518_v2, %v2514_v57  ;;  %v2511_v32 = vld [vmem:[#allocation11 + $0x140] sm:$0xff] }
 0x778   :  { %v2515_v41 = vld [vmem:[#allocation11 + $0x160] sm:$0xff] }
 0x77e   :  { %v3851_v12 = vpop.eup %3850 }
 0x77f   :  { %v3853_v60 = vpop.eup %3852  ;;  %v1931_v19 = vadd.f32 1.0, %v3851_v12  ;;  %v2473_v12 = vld [vmem:[#allocation11 + $0x10] sm:$0xff] }
 0x780   :  { %v1937_v1 = vadd.f32 1.0, %v3853_v60  ;;  %v3855_v5 = vpop.eup %3854  ;;  %v2477_v60 = vld [vmem:[#allocation11 + $0x30] sm:$0xff] }
 0x781   :  { %3858 = vrcp.f32 %v1931_v19  ;;  %v3857_v10 = vpop.eup %3856  ;;  %v1944_v24 = vadd.f32 1.0, %v3855_v5  ;;  %v3702_v19 = vpack.c.bf16 %v2477_v60, %v2473_v12  ;;  %v2484_v5 = vld [vmem:[#allocation11 + $0x68] sm:$0xff]  ;;  %v2517_v12 = vld [vmem:[#allocation11 + $0x170] sm:$0xff] }
 0x782   :  { %3860 = vrcp.f32 %v1937_v1  ;;  %v2480_v1 = vld [vmem:[#allocation11 + $0x48] sm:$0xff] }
 0x783   :  { %3862 = vrcp.f32 %v1944_v24  ;;  %v2520_v60 = vld [vmem:[#allocation11 + $0x188] sm:$0xff] }
 0x78b   :  { %v3859_v11 = vpop.eup %3858 }
 0x78c   :  { %v3861_v54 = vpop.eup %3860  ;;  %v1951_v62 = vmul.f32 %v3859_v11, %v3857_v10  ;;  %v2482_v10 = vld [vmem:[#allocation11 + $0x58] sm:$0xff] }
 0x78d   :  { %v1950_v29 = vmul.f32 %v3861_v54, %v1948_v13  ;;  %v3863_v36 = vpop.eup %3862  ;;  %v2486_v11 = vld [vmem:[#allocation11 + $0x78] sm:$0xff]  ;;  %v2479_v13 = vld [vmem:[#allocation11 + $0x40] sm:$0xff] }
 0x78e   :  { %v2483_v54 = vld [vmem:[#allocation11 + $0x60] sm:$0xff] }
 0x78f   :  { %v4673_v31 = vadd.f32 %v1951_v62, %v1950_v29  ;;  %v3704_v62 = vpack.c.bf16 %v2486_v11, %v2482_v10  ;;  %v3674_v24 = vpack.c.bf16 %v2483_v54, %v2479_v13  ;;  %v2481_v29 = vld [vmem:[#allocation11 + $0x50] sm:$0xff]  ;;  %v2522_v10 = vld [vmem:[#allocation11 + $0x198] sm:$0xff]  ;;  %v2519_v11 = vld [vmem:[#allocation11 + $0x180] sm:$0xff] }
 0x790   :  { %v2523_v54 = vld [vmem:[#allocation11 + $0x1a0] sm:$0xff] }
 0x791   :  { %3864 = vtanh.f32 %v4673_v31 }
 0x79b   :  { %v3865_v46 = vpop.eup %3864 }
 0x79c   :  { %v1954_v61 = vmul.f32 %v3865_v46, %v3863_v36  ;;  %v2488_v46 = vld [vmem:[#allocation11 + $0x88] sm:$0xff] }
 0x79e   :  { %1955 = vst [vmem:[#allocation3 + $0x8] sm:$0x3] %v1954_v61  ;;  %2089 = vmatmul.mubr.f32.vlgmr.msra.gmra.mrb[16].mxu0 %v1954_v61  ;;  %2160 = vmatmul.mubr.f32.vlgmr.msra.gmra.mrb[16].mxu1 %v1954_v61  ;;  %v2492_v61 = vld [vmem:[#allocation11 + $0xa8] sm:$0xff] }
 0x79f   :  { %3607 = vmatpush1.bf16.msra.mxu0 %v4502_v20  ;;  %3639 = vmatpush1.bf16.msra.mxu1 %v4505_v27 }
 0x7a0   :  { %3609 = vmatprep.subr.bf16.mxu0 %v4510_v30  ;;  %3641 = vmatprep.subr.bf16.mxu1 %v4512_v42 }
 0x7a1   :  { %2345 = vmatprep.mubr.f32.mxu0 %v4089_v14  ;;  %2416 = vmatprep.mubr.f32.mxu1 %v4089_v14 }
 0x7a3   :  { %3611 = vmatpush1.bf16.msra.mxu0 %v4514_v3  ;;  %3643 = vmatpush1.bf16.msra.mxu1 %v4517_v47  ;;  %v1956_v47 = vld [vmem:[#allocation2 + $0x20] sm:$0xc] }
 0x7a4   :  { %3613 = vmatprep.subr.bf16.mxu0 %v4522_v33  ;;  %3645 = vmatprep.subr.bf16.mxu1 %v4524_v43 }
 0x7a7   :  { %3615 = vmatpush1.bf16.msra.mxu0 %v4526_v44  ;;  %3647 = vmatpush1.bf16.msra.mxu1 %v4529_v56  ;;  %v1957_v44 = vld [vmem:[#allocation2 + $0x28] sm:$0xc] }
 0x7a8   :  { %3617 = vmatprep.subr.bf16.mxu0 %v4534_v8  ;;  %3649 = vmatprep.subr.bf16.mxu1 %v4536_v22 }
 0x7ab   :  { %3619 = vmatpush1.bf16.msra.mxu0 %v4538_v23  ;;  %3651 = vmatpush1.bf16.msra.mxu1 %v4541_v38  ;;  %v1959_v38 = vld [vmem:[#allocation2 + $0x38] sm:$0xc] }
 0x7ac   :  { %3621 = vmatprep.subr.bf16.mxu0 %v4546_v55  ;;  %3653 = vmatprep.subr.bf16.mxu1 %v4548_v49 }
 0x7af   :  { %3623 = vmatpush1.bf16.msra.mxu0 %v4550_v59  ;;  %3655 = vmatpush1.bf16.msra.mxu1 %v4553_v6  ;;  %v1958_v59 = vld [vmem:[#allocation2 + $0x30] sm:$0xc] }
 0x7b0   :  { %3625 = vmatprep.subr.bf16.mxu0 %v4557_v15  ;;  %3657 = vmatprep.subr.bf16.mxu1 %v4559_v16 }
 0x7b3   :  { %3627 = vmatpush1.bf16.msra.mxu0 %v4562_v28  ;;  %3659 = vmatpush1.bf16.msra.mxu1 %v4566_v37 }
 0x7b4   :  { %3629 = vmatprep.subr.bf16.mxu0 %v4568_v45  ;;  %3661 = vmatprep.subr.bf16.mxu1 %v4570_v26 }
 0x7b7   :  { %3631 = vmatpush1.bf16.msra.mxu0 %v4573_v52  ;;  %3663 = vmatpush1.bf16.msra.mxu1 %v4577_v4 }
 0x7b8   :  { %3633 = vmatprep.subr.bf16.mxu0 %v4579_v9  ;;  %3665 = vmatprep.subr.bf16.mxu1 %v4582_v35  ;;  %v2202_v9 = vrot.slane %v4673_v31, 6  ;;  %v2485_v31 = vld [vmem:[#allocation11 + $0x70] sm:$0xff] }
 0x7b9   :  { %v3706_v36 = vpack.c.bf16 %v2485_v31, %v2481_v29  ;;  %v2528_v29 = vld [vmem:[#allocation11 + $0x1c8] sm:$0xff] }
 0x7ba   :  { %v2532_v31 = vld [vmem:[#allocation11 + $0x1e8] sm:$0xff] }
 0x7bb   :  { %3635 = vmatpush1.bf16.msra.mxu0 %v4585_v51  ;;  %3667 = vmatpush1.bf16.msra.mxu1 %v4589_v58 }
 0x7bc   :  { %3669 = vmatprep.subr.bf16.mxu0 %v3668_v17  ;;  %3701 = vmatprep.subr.bf16.mxu1 %v3700_v50  ;;  %v2513_v50 = vld [vmem:[#allocation11 + $0x150] sm:$0xff] }
 0x871   :  { %v2090_v20 = vpop.f32.mrb[16].mxu0  ;;  %v2161_v27 = vpop.f32.mrb[16].mxu1 }
 0x872   :  { %v2170_v30 = vrot.slane %v2090_v20, 6  ;;  %v2092_v42 = vpop.f32.mrb[17].mxu0  ;;  %v2163_v3 = vpop.f32.mrb[17].mxu1  ;;  %v2172_v49 = vrot.slane %v2161_v27, 6  ;;  %v2490_v20 = vld [vmem:[#allocation11 + $0x98] sm:$0xff]  ;;  %v3676_v27 = vpack.c.bf16 %v2492_v61, %v2488_v46  ;;  %v3694_v46 = vpack.c.bf16 %v2523_v54, %v2519_v11  ;;  %v2732_v11 = vld [vmem:[#allocation12 + $0x20] sm:$0xff] }
 0x873   :  { %v2171_v33 = vrot.slane %v2092_v42, 6  ;;  %v2173_v23 = vrot.slane %v2163_v3, 6  ;;  %v2487_v42 = vld [vmem:[#allocation11 + $0x80] sm:$0xff]  ;;  %v2534_v61 = vld [vmem:[#allocation11 + $0x1f8] sm:$0xff] }
 0x874   :  { %v2178_v43 = vadd.f32 %v2170_v30, %v1956_v47  ;;  %v2180_v15 = vadd.f32 %v2172_v49, %v1958_v59  ;;  %v2494_v30 = vld [vmem:[#allocation11 + $0xb8] sm:$0xff]  ;;  %v2491_v3 = vld [vmem:[#allocation11 + $0xa0] sm:$0xff] }
 0x875   :  { %v2179_v56 = vadd.f32 %v2171_v33, %v1957_v44  ;;  %v2181_v55 = vadd.f32 %v2173_v23, %v1959_v38  ;;  %v3708_v47 = vpack.c.bf16 %v2494_v30, %v2490_v20  ;;  %v3678_v33 = vpack.c.bf16 %v2491_v3, %v2487_v42  ;;  %v2493_v44 = vld [vmem:[#allocation11 + $0xb0] sm:$0xff]  ;;  %v2498_v23 = vld [vmem:[#allocation11 + $0xd8] sm:$0xff]  ;;  %v2495_v49 = vld [vmem:[#allocation11 + $0xc0] sm:$0xff] }
 0x876   :  { %v2991_v8 = vmul.f32 -1.442695, %v2178_v43  ;;  %v2489_v43 = vld [vmem:[#allocation11 + $0x90] sm:$0xff]  ;;  %v2499_v59 = vld [vmem:[#allocation11 + $0xe0] sm:$0xff] }
 0x877   :  { %v2992_v22 = vmul.f32 -1.442695, %v2179_v56  ;;  %v2993_v6 = vmul.f32 -1.442695, %v2181_v55  ;;  %v3710_v56 = vpack.c.bf16 %v2493_v44, %v2489_v43  ;;  %v2502_v55 = vld [vmem:[#allocation11 + $0xf8] sm:$0xff]  ;;  %v2527_v30 = vld [vmem:[#allocation11 + $0x1c0] sm:$0xff] }
 0x878   :  { %3866 = vpow2.f32 %v2991_v8  ;;  %v2496_v8 = vld [vmem:[#allocation11 + $0xc8] sm:$0xff]  ;;  %v2531_v42 = vld [vmem:[#allocation11 + $0x1e0] sm:$0xff] }
 0x879   :  { %3868 = vpow2.f32 %v2992_v22  ;;  %v2500_v22 = vld [vmem:[#allocation11 + $0xe8] sm:$0xff]  ;;  %v3698_v43 = vpack.c.bf16 %v2531_v42, %v2527_v30  ;;  %v2740_v30 = vld [vmem:[#allocation12 + $0x60] sm:$0xff] }
 0x87a   :  { %3870 = vpow2.f32 %v2993_v6  ;;  %v3680_v38 = vpack.c.bf16 %v2500_v22, %v2496_v8  ;;  %v3712_v6 = vpack.c.bf16 %v2502_v55, %v2498_v23  ;;  %v2210_v55 = vld [vmem:[#allocation2 + $0x20] sm:$0x30]  ;;  %v2741_v42 = vld [vmem:[#allocation12 + $0x68] sm:$0xff] }
 0x87b   :  { %3872 = vtanh.f32 %v2180_v15  ;;  %v3682_v15 = vpack.c.bf16 %v2499_v59, %v2495_v49 }
 0x882   :  { %v3867_v16 = vpop.eup %3866 }
 0x883   :  { %v3869_v28 = vpop.eup %3868  ;;  %v2185_v37 = vadd.f32 1.0, %v3867_v16  ;;  %v2497_v16 = vld [vmem:[#allocation11 + $0xd0] sm:$0xff] }
 0x884   :  { %v2191_v45 = vadd.f32 1.0, %v3869_v28  ;;  %v3871_v26 = vpop.eup %3870  ;;  %v2501_v28 = vld [vmem:[#allocation11 + $0xf0] sm:$0xff] }
 0x885   :  { %3874 = vrcp.f32 %v2185_v37  ;;  %v3873_v52 = vpop.eup %3872  ;;  %v2198_v58 = vadd.f32 1.0, %v3871_v26  ;;  %v3714_v37 = vpack.c.bf16 %v2501_v28, %v2497_v16  ;;  %v2508_v26 = vld [vmem:[#allocation11 + $0x128] sm:$0xff] }
 0x886   :  { %3876 = vrcp.f32 %v2191_v45  ;;  %v2504_v45 = vld [vmem:[#allocation11 + $0x108] sm:$0xff] }
 0x887   :  { %3878 = vrcp.f32 %v2198_v58 }
 0x88f   :  { %v3875_v4 = vpop.eup %3874 }
 0x890   :  { %v3877_v35 = vpop.eup %3876  ;;  %v2205_v51 = vmul.f32 %v3875_v4, %v3873_v52  ;;  %v2506_v52 = vld [vmem:[#allocation11 + $0x118] sm:$0xff]  ;;  %v3684_v4 = vpack.c.bf16 %v2508_v26, %v2504_v45  ;;  %v2213_v45 = vld [vmem:[#allocation2 + $0x38] sm:$0x30] }
 0x891   :  { %v2204_v0 = vmul.f32 %v3877_v35, %v2202_v9  ;;  %v3879_v25 = vpop.eup %3878  ;;  %v2510_v9 = vld [vmem:[#allocation11 + $0x138] sm:$0xff]  ;;  %v2503_v35 = vld [vmem:[#allocation11 + $0x100] sm:$0xff] }
 0x892   :  { %v3716_v58 = vpack.c.bf16 %v2510_v9, %v2506_v52 }
 0x893   :  { %v4709_v48 = vadd.f32 %v2205_v51, %v2204_v0  ;;  %v2507_v51 = vld [vmem:[#allocation11 + $0x120] sm:$0xff] }
 0x894   :  { %v3686_v0 = vpack.c.bf16 %v2507_v51, %v2503_v35 }
 0x895   :  { %3880 = vtanh.f32 %v4709_v48 }
 0x89f   :  { %v3881_v34 = vpop.eup %3880 }
 0x8a0   :  { %v2208_v39 = vmul.f32 %v3881_v34, %v3879_v25  ;;  %v2505_v25 = vld [vmem:[#allocation11 + $0x110] sm:$0xff] }
 0x8a1   :  { %v2509_v34 = vld [vmem:[#allocation11 + $0x130] sm:$0xff] }
 0x8a2   :  { %2209 = vst [vmem:[#allocation3 + $0x8] sm:$0xc] %v2208_v39  ;;  %v2279_v40 = vrot.slane %v2208_v39, 2  ;;  %v2512_v39 = vld [vmem:[#allocation11 + $0x148] sm:$0xff] }
 0x8a3   :  { %v3688_v17 = vpack.c.bf16 %v2516_v53, %v2512_v39  ;;  %v2459_v53 = vrot.slane %v4709_v48, 6  ;;  %v2729_v48 = vld [vmem:[#allocation12 + $0x8] sm:$0xff] }
 0x8a4   :  { %2346 = vmatmul.mubr.f32.vlgmr.msra.gmra.mrb[18].mxu0 %v2279_v40  ;;  %2417 = vmatmul.mubr.f32.vlgmr.msra.gmra.mrb[18].mxu1 %v2279_v40  ;;  %v3718_v40 = vpack.c.bf16 %v2509_v34, %v2505_v25 }
 0x8a5   :  { %2602 = vmatprep.mubr.f32.mxu0 %v4089_v14  ;;  %2673 = vmatprep.mubr.f32.mxu1 %v4089_v14  ;;  %v3672_v14 = vpack.c.bf16 %v2484_v5, %v2480_v1  ;;  %v3722_v1 = vpack.c.bf16 %v2517_v12, %v2513_v50 }
 0x8a6   :  { %3671 = vmatpush1.bf16.msra.mxu0 %v3670_v63  ;;  %3703 = vmatpush1.bf16.msra.mxu1 %v3702_v19  ;;  %v3690_v63 = vpack.c.bf16 %v2515_v41, %v2511_v32  ;;  %v2524_v19 = vld [vmem:[#allocation11 + $0x1a8] sm:$0xff] }
 0x8a7   :  { %3673 = vmatprep.subr.bf16.mxu0 %v3672_v14  ;;  %3705 = vmatprep.subr.bf16.mxu1 %v3704_v62  ;;  %v3692_v5 = vpack.c.bf16 %v2524_v19, %v2520_v60  ;;  %v2526_v14 = vld [vmem:[#allocation11 + $0x1b8] sm:$0xff]  ;;  %v2521_v62 = vld [vmem:[#allocation11 + $0x190] sm:$0xff]  ;;  %v2728_v19 = vld [vmem:[#allocation12] sm:$0xff] }
 0x8a8   :  { %v3724_v13 = vpack.c.bf16 %v2526_v14, %v2522_v10  ;;  %v2726_v60 = vld [vmem:[#allocation3] sm:$0xff]  ;;  %v2731_v10 = vld [vmem:[#allocation12 + $0x18] sm:$0xff] }
 0x8aa   :  { %3675 = vmatpush1.bf16.msra.mxu0 %v3674_v24  ;;  %3707 = vmatpush1.bf16.msra.mxu1 %v3706_v36  ;;  %v2525_v24 = vld [vmem:[#allocation11 + $0x1b0] sm:$0xff]  ;;  %v2530_v36 = vld [vmem:[#allocation11 + $0x1d8] sm:$0xff] }
 0x8ab   :  { %3677 = vmatprep.subr.bf16.mxu0 %v3676_v27  ;;  %3709 = vmatprep.subr.bf16.mxu1 %v3708_v47  ;;  %v3726_v20 = vpack.c.bf16 %v2525_v24, %v2521_v62  ;;  %v3696_v27 = vpack.c.bf16 %v2532_v31, %v2528_v29  ;;  %v3728_v3 = vpack.c.bf16 %v2534_v61, %v2530_v36  ;;  %v2529_v47 = vld [vmem:[#allocation11 + $0x1d0] sm:$0xff]  ;;  %v2735_v24 = vld [vmem:[#allocation12 + $0x38] sm:$0xff]  ;;  %v2736_v31 = vld [vmem:[#allocation12 + $0x40] sm:$0xff] }
 0x8ac   :  { %v2734_v62 = vld [vmem:[#allocation12 + $0x30] sm:$0xff]  ;;  %v2737_v36 = vld [vmem:[#allocation12 + $0x48] sm:$0xff] }
 0x8ad   :  { %v3744_v29 = vpack.c.bf16 %v2735_v24, %v2734_v62  ;;  %v2738_v61 = vld [vmem:[#allocation12 + $0x50] sm:$0xff] }
 0x8ae   :  { %3679 = vmatpush1.bf16.msra.mxu0 %v3678_v33  ;;  %3711 = vmatpush1.bf16.msra.mxu1 %v3710_v56  ;;  %v2533_v33 = vld [vmem:[#allocation11 + $0x1f0] sm:$0xff] }
 0x8af   :  { %3681 = vmatprep.subr.bf16.mxu0 %v3680_v38  ;;  %3713 = vmatprep.subr.bf16.mxu1 %v3712_v6  ;;  %v3730_v44 = vpack.c.bf16 %v2533_v33, %v2529_v47  ;;  %v2211_v6 = vld [vmem:[#allocation2 + $0x28] sm:$0x30]  ;;  %v3756_v47 = vpack.c.bf16 %v2741_v42, %v2740_v30 }
 0x8b0   :  { %v2743_v33 = vld [vmem:[#allocation12 + $0x78] sm:$0xff] }
 0x8b2   :  { %3683 = vmatpush1.bf16.msra.mxu0 %v3682_v15  ;;  %3715 = vmatpush1.bf16.msra.mxu1 %v3714_v37 }
 0x8b3   :  { %3685 = vmatprep.subr.bf16.mxu0 %v3684_v4  ;;  %3717 = vmatprep.subr.bf16.mxu1 %v3716_v58  ;;  %v2212_v4 = vld [vmem:[#allocation2 + $0x30] sm:$0x30] }
 0x8b6   :  { %3687 = vmatpush1.bf16.msra.mxu0 %v3686_v0  ;;  %3719 = vmatpush1.bf16.msra.mxu1 %v3718_v40 }
 0x8b7   :  { %3689 = vmatprep.subr.bf16.mxu0 %v3688_v17  ;;  %3721 = vmatprep.subr.bf16.mxu1 %v3720_v18 }
 0x8ba   :  { %3691 = vmatpush1.bf16.msra.mxu0 %v3690_v63  ;;  %3723 = vmatpush1.bf16.msra.mxu1 %v3722_v1  ;;  %v3732_v1 = vpack.c.bf16 %v2729_v48, %v2728_v19 }
 0x8bb   :  { %3693 = vmatprep.subr.bf16.mxu0 %v3692_v5  ;;  %3725 = vmatprep.subr.bf16.mxu1 %v3724_v13  ;;  %v2730_v5 = vld [vmem:[#allocation12 + $0x10] sm:$0xff]  ;;  %v2733_v13 = vld [vmem:[#allocation12 + $0x28] sm:$0xff] }
 0x8bc   :  { %v3736_v14 = vpack.c.bf16 %v2731_v10, %v2730_v5  ;;  %v3740_v54 = vpack.c.bf16 %v2733_v13, %v2732_v11 }
 0x8be   :  { %3695 = vmatpush1.bf16.msra.mxu0 %v3694_v46  ;;  %3727 = vmatpush1.bf16.msra.mxu1 %v3726_v20  ;;  %v3748_v46 = vpack.c.bf16 %v2737_v36, %v2736_v31  ;;  %v2739_v20 = vld [vmem:[#allocation12 + $0x58] sm:$0xff] }
 0x8bf   :  { %3697 = vmatprep.subr.bf16.mxu0 %v3696_v27  ;;  %3729 = vmatprep.subr.bf16.mxu1 %v3728_v3  ;;  %v3752_v27 = vpack.c.bf16 %v2739_v20, %v2738_v61  ;;  %v2742_v3 = vld [vmem:[#allocation12 + $0x70] sm:$0xff] }
 0x8c2   :  { %3699 = vmatpush1.bf16.msra.mxu0 %v3698_v43  ;;  %3731 = vmatpush1.bf16.msra.mxu1 %v3730_v44  ;;  %v3760_v43 = vpack.c.bf16 %v2743_v33, %v2742_v3 }
 0x8c3   :  { %3733 = vmatprep.subr.bf16.mxu0 %v3732_v1 }
 0x977   :  { %v2347_v56 = vpop.f32.mrb[18].mxu0  ;;  %v2418_v8 = vpop.f32.mrb[18].mxu1 }
 0x978   :  { %v2427_v22 = vrot.slane %v2347_v56, 4  ;;  %v2349_v23 = vpop.f32.mrb[19].mxu0  ;;  %v2420_v38 = vpop.f32.mrb[19].mxu1  ;;  %v2429_v52 = vrot.slane %v2418_v8, 4 }
 0x979   :  { %v2428_v49 = vrot.slane %v2349_v23, 4  ;;  %v2430_v37 = vrot.slane %v2420_v38, 4  ;;  %v2467_v38 = vld [vmem:[#allocation2 + $0x20] sm:$0xc0] }
 0x97a   :  { %v2435_v59 = vadd.f32 %v2427_v22, %v2210_v55  ;;  %v2437_v35 = vadd.f32 %v2429_v52, %v2212_v4  ;;  %v2469_v52 = vld [vmem:[#allocation2 + $0x30] sm:$0xc0] }
 0x97b   :  { %v2436_v15 = vadd.f32 %v2428_v49, %v2211_v6  ;;  %v2438_v26 = vadd.f32 %v2430_v37, %v2213_v45  ;;  %v2470_v37 = vld [vmem:[#allocation2 + $0x38] sm:$0xc0] }
 0x97c   :  { %v2994_v16 = vmul.f32 -1.442695, %v2435_v59  ;;  %v2468_v59 = vld [vmem:[#allocation2 + $0x28] sm:$0xc0] }
 0x97d   :  { %v2995_v28 = vmul.f32 -1.442695, %v2436_v15  ;;  %v2996_v9 = vmul.f32 -1.442695, %v2438_v26 }
 0x97e   :  { %3882 = vpow2.f32 %v2994_v16 }
 0x97f   :  { %3884 = vpow2.f32 %v2995_v28 }
 0x980   :  { %3886 = vpow2.f32 %v2996_v9 }
 0x981   :  { %3888 = vtanh.f32 %v2437_v35 }
 0x988   :  { %v3883_v51 = vpop.eup %3882 }
 0x989   :  { %v3885_v58 = vpop.eup %3884  ;;  %v2442_v0 = vadd.f32 1.0, %v3883_v51 }
 0x98a   :  { %v2448_v25 = vadd.f32 1.0, %v3885_v58  ;;  %v3887_v34 = vpop.eup %3886 }
 0x98b   :  { %3890 = vrcp.f32 %v2442_v0  ;;  %v3889_v39 = vpop.eup %3888  ;;  %v2455_v17 = vadd.f32 1.0, %v3887_v34 }
 0x98c   :  { %3892 = vrcp.f32 %v2448_v25 }
 0x98d   :  { %3894 = vrcp.f32 %v2455_v17 }
 0x995   :  { %v3891_v40 = vpop.eup %3890 }
 0x996   :  { %v3893_v57 = vpop.eup %3892  ;;  %v2462_v2 = vmul.f32 %v3891_v40, %v3889_v39 }
 0x997   :  { %v2461_v18 = vmul.f32 %v3893_v57, %v2459_v53  ;;  %v3895_v41 = vpop.eup %3894 }
 0x999   :  { %v4715_v32 = vadd.f32 %v2462_v2, %v2461_v18 }
 0x99b   :  { %3896 = vtanh.f32 %v4715_v32  ;;  %v2716_v40 = vrot.slane %v4715_v32, 6 }
 0x9a5   :  { %v3897_v50 = vpop.eup %3896 }
 0x9a6   :  { %v2465_v63 = vmul.f32 %v3897_v50, %v3895_v41 }
 0x9a8   :  { %2466 = vst [vmem:[#allocation3 + $0x8] sm:$0x30] %v2465_v63  ;;  %v2536_v12 = vrot.slane %v2465_v63, 4 }
 0x9aa   :  { %2603 = vmatmul.mubr.f32.vlgmr.msra.gmra.mrb[20].mxu0 %v2536_v12  ;;  %2674 = vmatmul.mubr.f32.vlgmr.msra.gmra.mrb[20].mxu1 %v2536_v12  ;;  %v3000_v12 = vld [vmem:[#allocation14] ss:$0 sm:$0xff] }
 0x9ab   :  { %3117 = vmatprep.mubr.f32.mxu0 %v2726_v60  ;;  %3735 = vmatpush3.bf16.msra.mxu0 %v3732_v1 }
 0x9ac   :  { %3737 = vmatprep.subr.bf16.mxu0 %v3736_v14 }
 0x9af   :  { %3739 = vmatpush3.bf16.msra.mxu0 %v3736_v14 }
 0x9b0   :  { %3741 = vmatprep.subr.bf16.mxu0 %v3740_v54 }
 0x9b3   :  { %3743 = vmatpush3.bf16.msra.mxu0 %v3740_v54 }
 0x9b4   :  { %3745 = vmatprep.subr.bf16.mxu0 %v3744_v29 }
 0x9b7   :  { %3747 = vmatpush3.bf16.msra.mxu0 %v3744_v29 }
 0x9b8   :  { %3749 = vmatprep.subr.bf16.mxu0 %v3748_v46 }
 0x9bb   :  { %3751 = vmatpush3.bf16.msra.mxu0 %v3748_v46 }
 0x9bc   :  { %3753 = vmatprep.subr.bf16.mxu0 %v3752_v27 }
 0x9bf   :  { %3755 = vmatpush3.bf16.msra.mxu0 %v3752_v27 }
 0x9c0   :  { %3757 = vmatprep.subr.bf16.mxu0 %v3756_v47 }
 0x9c3   :  { %3759 = vmatpush3.bf16.msra.mxu0 %v3756_v47 }
 0x9c4   :  { %3761 = vmatprep.subr.bf16.mxu0 %v3760_v43 }
 0x9c7   :  { %3763 = vmatpush3.bf16.msra.mxu0 %v3760_v43 }
 0xa7d   :  { %v2604_v44 = vpop.f32.mrb[20].mxu0  ;;  %v2675_v56 = vpop.f32.mrb[20].mxu1 }
 0xa7e   :  { %v2684_v8 = vrot.slane %v2604_v44, 2  ;;  %v2606_v22 = vpop.f32.mrb[21].mxu0  ;;  %v2677_v23 = vpop.f32.mrb[21].mxu1  ;;  %v2686_v26 = vrot.slane %v2675_v56, 2 }
 0xa7f   :  { %v2685_v55 = vrot.slane %v2606_v22, 2  ;;  %v2687_v28 = vrot.slane %v2677_v23, 2 }
 0xa80   :  { %v2692_v49 = vadd.f32 %v2684_v8, %v2467_v38  ;;  %v2694_v9 = vadd.f32 %v2686_v26, %v2469_v52 }
 0xa81   :  { %v2693_v6 = vadd.f32 %v2685_v55, %v2468_v59  ;;  %v2695_v45 = vadd.f32 %v2687_v28, %v2470_v37 }
 0xa82   :  { %v2997_v15 = vmul.f32 -1.442695, %v2692_v49 }
 0xa83   :  { %v2998_v16 = vmul.f32 -1.442695, %v2693_v6  ;;  %v2999_v4 = vmul.f32 -1.442695, %v2695_v45 }
 0xa84   :  { %3898 = vpow2.f32 %v2997_v15 }
 0xa85   :  { %3900 = vpow2.f32 %v2998_v16 }
 0xa86   :  { %3902 = vpow2.f32 %v2999_v4 }
 0xa87   :  { %3904 = vtanh.f32 %v2694_v9 }
 0xa8e   :  { %v3899_v35 = vpop.eup %3898 }
 0xa8f   :  { %v3901_v51 = vpop.eup %3900  ;;  %v2699_v58 = vadd.f32 1.0, %v3899_v35 }
 0xa90   :  { %v2705_v0 = vadd.f32 1.0, %v3901_v51  ;;  %v3903_v25 = vpop.eup %3902 }
 0xa91   :  { %3906 = vrcp.f32 %v2699_v58  ;;  %v3905_v34 = vpop.eup %3904  ;;  %v2712_v2 = vadd.f32 1.0, %v3903_v25 }
 0xa92   :  { %3908 = vrcp.f32 %v2705_v0 }
 0xa93   :  { %3910 = vrcp.f32 %v2712_v2 }
 0xa9b   :  { %v3907_v39 = vpop.eup %3906 }
 0xa9c   :  { %v3909_v53 = vpop.eup %3908  ;;  %v2719_v57 = vmul.f32 %v3907_v39, %v3905_v34 }
 0xa9d   :  { %v2718_v17 = vmul.f32 %v3909_v53, %v2716_v40  ;;  %v3911_v41 = vpop.eup %3910 }
 0xa9f   :  { %v2720_v18 = vadd.f32 %v2719_v57, %v2718_v17 }
 0xaa1   :  { %3912 = vtanh.f32 %v2720_v18  ;;  %2725 = vst [vmem:[%s4757_s14 - $0x6] sm:$0xc0] %v2720_v18 }
 0xaab   :  { %v3913_v50 = vpop.eup %3912 }
 0xaac   :  { %v2722_v63 = vmul.f32 %v3913_v50, %v3911_v41 }
 0xaae   :  { %2723 = vst [vmem:[#allocation3 + $0x8] sm:$0xc0] %v2722_v63  ;;  %2724 = vst [vmem:[%s4756_s13 - $0x6] sm:$0xc0] %v2722_v63 }
 0xab5   :  { %v2727_v32 = vld [vmem:[#allocation3 + $0x8] sm:$0xff] }
 0xab6   :  { %3118 = vmatmul.mubr.f32.vlgmr.msra.gmra.mrb[22].mxu0 %v2727_v32 }
 0xb89   :  { %v3119_v60 = vpop.f32.mrb[22].mxu0 }
 0xb8a   :  { %v2823_v19 = vadd.f32 %v3119_v60, %v3000_v12  ;;  %v2817_v48 = vpop.f32.mrb[23].mxu0 }
 0xb8b   :  { %v2818_v1 = vadd.f32 %v3000_v12, %v2817_v48 }
 0xb8c   :  { %v2845_v5 = vcombine.high %v2823_v19, %v2823_v19  ;;  %v2852_v10 = vrot.slane %v2823_v19, %v4271_v7 }
 0xb8d   :  { %v2828_v14 = vcombine.high %v2818_v1, %v2818_v1  ;;  %v2835_v11 = vrot.slane %v2818_v1, %v4271_v7 }
 0xb8e   :  { %v2859_v13 = vrot.slane %v2845_v5, %v4271_v7  ;;  %v2860_v54 = vcombine.high %v2852_v10, %v2852_v10 }
 0xb8f   :  { %v2842_v62 = vrot.slane %v2828_v14, %v4271_v7  ;;  %v2843_v24 = vcombine.high %v2835_v11, %v2835_v11 }
 0xb90   :  { %v2861_v29 = vcombine.high %v2859_v13, %v2859_v13  ;;  %v2888_v31 = vcombine.low %v2852_v10, %v2860_v54 }
 0xb91   :  { %v2844_v36 = vcombine.high %v2842_v62, %v2842_v62  ;;  %v2870_v46 = vcombine.low %v2835_v11, %v2843_v24 }
 0xb92   :  { %v2897_v61 = vcombine.low %v2859_v13, %v2861_v29  ;;  %v2895_v27 = vrot.slane %v2888_v31, %v4290_v21 }
 0xb93   :  { %v2879_v20 = vcombine.low %v2842_v62, %v2844_v36  ;;  %v2877_v42 = vrot.slane %v2870_v46, %v4290_v21 }
 0xb94   :  { %v2904_v30 = vrot.slane %v2897_v61, %v4290_v21 }
 0xb95   :  { %v2886_v3 = vrot.slane %v2879_v20, %v4290_v21 }
 0xb96   :  { %v2915_v47 = vcombine.low %v2895_v27, %v2904_v30  ;;  %v3002_v33 = vcombine.high %v2895_v27, %v2904_v30 }
 0xb97   :  { %v2914_v43 = vcombine.low %v2877_v42, %v2886_v3  ;;  %v3001_v44 = vcombine.high %v2877_v42, %v2886_v3 }
 0xb98   :  { %v2929_v56 = vrot.slane %v2915_v47, %v4271_v7  ;;  %v2946_v8 = vrot.slane %v3002_v33, %v4271_v7 }
 0xb99   :  { %v2922_v22 = vrot.slane %v2914_v43, %v4271_v7  ;;  %v2939_v23 = vrot.slane %v3001_v44, %v4271_v7 }
 0xb9b   :  { %v2930_v38 = vcombine.low %v2922_v22, %v2929_v56  ;;  %v2947_v55 = vcombine.low %v2939_v23, %v2946_v8 }
 0xb9d   :  { %2950 = vst [vmem:[%s4755_s12] sm:$0xff] %v2930_v38  ;;  %2951 = vst [vmem:[%s4755_s12 + $0x8] sm:$0xff] %v2947_v55 }
 0xb9e   :  { %2964 = vsyncpa [#allocation5], 1 }
 0xb9f   :  { %2965 = vsyncpa [#allocation7], 1 }
 0xba0   :  { %2966 = vsyncpa [#allocation10], 1 }
 0xba1   :  { %2967 = vsyncpa [#allocation13], 1 }

</bundles_post_ra>
